<compile_context>
chip_gen: v7x
topology: tpu7x:2x2x1
jax: 0.10.0
libtpu: 0.0.40
codegen_flags: <defaults>
</compile_context>

<pallas_src>
import math
import functools

import jax
import jax.numpy as jnp
from jax.experimental import pallas as pl
from jax.experimental.pallas import tpu as pltpu


# ---------------------------------------------------------------------------
# Plain-JAX glue: patch extraction and sinusoidal positional-encoding table.
# ---------------------------------------------------------------------------
def patchify(x, k):
    """(B, C, H, W) -> (B, N, C*k*k), N = (H/k)*(W/k), channel-major per patch."""
    B, C, H, W = x.shape
    nh, nw = H // k, W // k
    x = x.reshape(B, C, nh, k, nw, k)
    x = x.transpose(0, 2, 4, 1, 3, 5)          # (B, nh, nw, C, k, k)
    return x.reshape(B, nh * nw, C * k * k)


def sinusoidal_pe(S, D):
    pos = jnp.arange(S, dtype=jnp.float32)[:, None]
    div = jnp.exp(jnp.arange(0, D, 2, dtype=jnp.float32) * (-math.log(10000.0) / D))
    ang = pos * div                            # (S, D/2)
    return jnp.stack([jnp.sin(ang), jnp.cos(ang)], axis=-1).reshape(S, D)


# ---------------------------------------------------------------------------
# In-kernel helpers.
# ---------------------------------------------------------------------------
def _layer_norm(x, g, b, eps=1e-5):
    mu = jnp.mean(x, axis=-1, keepdims=True)
    ms = jnp.mean(x * x, axis=-1, keepdims=True)
    var = jnp.maximum(ms - mu * mu, 0.0)       # one-pass variance
    return (x - mu) * jax.lax.rsqrt(var + eps) * g + b


def _gelu_tanh(x):
    # TODO(synk): exact erf-GELU (nn.GELU default) -- tanh approximation used here.
    return 0.5 * x * (1.0 + jnp.tanh(0.7978845608028654 * (x + 0.044715 * x * x * x)))


# ---------------------------------------------------------------------------
# One fused kernel step = (one batch element, one encoder layer).
# grid = (B, num_layers); activations carried across layers in VMEM scratch.
# ---------------------------------------------------------------------------
def vit_kernel(patches_ref, wp_ref, bp_ref, cls_ref, pe0_ref, pe1_ref,
               ln1g_ref, ln1b_ref, wqkv_ref, bqkv_ref, wo_ref, bo_ref,
               ln2g_ref, ln2b_ref, w1_ref, b1_ref, w2_ref, b2_ref,
               wc_ref, bc_ref,
               out_ref,
               x_sc,
               *, num_heads, S, S_pad):
    li = pl.program_id(1)
    num_layers = pl.num_programs(1)
    D = wp_ref.shape[1]
    N = S - 1
    hd = D // num_heads
    scale = 1.0 / math.sqrt(hd)
    bf16 = jnp.bfloat16
    f32 = jnp.float32

    # ---- tokenize (first layer step only): patch proj + CLS + PE, ONE store ----
    @pl.when(li == 0)
    def _tokenize():
        proj = jnp.dot(patches_ref[0], wp_ref[...],
                       preferred_element_type=f32) + bp_ref[...]          # (N, D)
        rows = [cls_ref[...] + pe0_ref[...],                               # (1, D)
                proj + pe1_ref[...]]                                       # (N, D)
        if S_pad > S:
            rows.append(jnp.zeros((S_pad - S, D), f32))                    # pad rows
        x_sc[...] = jnp.concatenate(rows, axis=0)                          # (S_pad, D)

    x = x_sc[...]                                                          # (S_pad, D) f32

    # additive key-padding bias (columns >= S masked), hoisted out of the heads
    col = jax.lax.broadcasted_iota(jnp.int32, (1, S_pad), 1)
    mask_add = jnp.where(col < S, 0.0, -1e30).astype(f32)                  # (1, S_pad)

    # ---- multi-head self-attention (pre-LN), all heads in one batched matmul ----
    h1 = _layer_norm(x, ln1g_ref[0], ln1b_ref[0]).astype(bf16)
    qkv = jnp.dot(h1, wqkv_ref[0],
                  preferred_element_type=f32) + bqkv_ref[0]                # (S_pad, 3D)
    qkv_b = qkv.astype(bf16)

    def heads(off):   # (S_pad, D) lane slab -> (H, S_pad, hd)
        return jnp.stack(
            [qkv_b[:, off + h * hd: off + (h + 1) * hd] for h in range(num_heads)],
            axis=0)

    qh, kh, vh = heads(0), heads(D), heads(2 * D)

    s = jnp.einsum('hqd,hkd->hqk', qh, kh, preferred_element_type=f32) * scale
    s = s + mask_add                                                       # key-pad bias
    s = s - jnp.max(s, axis=-1, keepdims=True)
    e = jnp.exp(s)
    p = e * pl.reciprocal(jnp.sum(e, axis=-1, keepdims=True), approx=True)
    o = jnp.einsum('hqk,hkd->hqd', p.astype(bf16), vh,
                   preferred_element_type=f32)                             # (H, S_pad, hd)
    attn = jnp.concatenate([o[h] for h in range(num_heads)], axis=-1)      # (S_pad, D)
    attn = jnp.dot(attn.astype(bf16), wo_ref[0],
                   preferred_element_type=f32) + bo_ref[0]
    x = x + attn                                 # residual (dropout = identity)

    # ---- MLP (pre-LN) ----
    h2 = _layer_norm(x, ln2g_ref[0], ln2b_ref[0]).astype(bf16)
    m = jnp.dot(h2, w1_ref[0], preferred_element_type=f32) + b1_ref[0]     # (S_pad, Hm)
    m = _gelu_tanh(m).astype(bf16)
    m2 = jnp.dot(m, w2_ref[0], preferred_element_type=f32) + b2_ref[0]     # (S_pad, D)
    x = x + m2                                   # residual (dropout = identity)

    x_sc[...] = x                                # carry to next layer step

    # TODO(synk): the custom transformer.TransformerEncoder may apply a final
    # LayerNorm after the stack; not specified in the reference, omitted.

    # ---- classifier head on the CLS token (last layer step only) ----
    @pl.when(li == num_layers - 1)
    def _classify():
        logits = jnp.dot(x[0:1, :].astype(bf16), wc_ref[...],
                         preferred_element_type=f32) + bc_ref[...]         # (1, C_pad)
        out_ref[...] = logits.reshape(1, 1, -1)


# ---------------------------------------------------------------------------
# Parameter init (deterministic, synthetic) — lane-dense, stacked-over-layers.
# ---------------------------------------------------------------------------
def init_params(key, *, kernel_size, d_model, h_dim_mlp, num_heads,
                num_enc_layers, num_classes):
    P = 3 * kernel_size ** 2
    L = num_enc_layers
    c_pad = ((num_classes + 127) // 128) * 128
    keys = jax.random.split(key, 3 + L)
    f32, bf16 = jnp.float32, jnp.bfloat16

    def dense(k, fan_in, shape):
        return (jax.random.normal(k, shape, f32) / math.sqrt(fan_in)).astype(bf16)

    wc_core = jax.random.normal(keys[2], (d_model, num_classes), f32) / math.sqrt(d_model)
    wc = jnp.zeros((d_model, c_pad), f32).at[:, :num_classes].set(wc_core).astype(bf16)

    wqkv, wo, w1, w2 = [], [], [], []
    for li in range(L):
        lk = jax.random.split(keys[3 + li], 4)
        wqkv.append(dense(lk[0], d_model, (d_model, 3 * d_model)))
        wo.append(dense(lk[1], d_model, (d_model, d_model)))
        w1.append(dense(lk[2], d_model, (d_model, h_dim_mlp)))
        w2.append(dense(lk[3], h_dim_mlp, (h_dim_mlp, d_model)))

    return {
        "wp": dense(keys[0], P, (P, d_model)),
        "bp": jnp.zeros((1, d_model), f32),
        "cls": 0.02 * jax.random.normal(keys[1], (1, d_model), f32),
        "wc": wc,
        "bc": jnp.zeros((1, c_pad), f32),
        "ln1_g": jnp.ones((L, 1, d_model), f32),
        "ln1_b": jnp.zeros((L, 1, d_model), f32),
        "wqkv": jnp.stack(wqkv),                         # (L, D, 3D) bf16
        "bqkv": jnp.zeros((L, 1, 3 * d_model), f32),
        "wo": jnp.stack(wo),                             # (L, D, D) bf16
        "bo": jnp.zeros((L, 1, d_model), f32),
        "ln2_g": jnp.ones((L, 1, d_model), f32),
        "ln2_b": jnp.zeros((L, 1, d_model), f32),
        "w1": jnp.stack(w1),                             # (L, D, Hm) bf16
        "b1": jnp.zeros((L, 1, h_dim_mlp), f32),
        "w2": jnp.stack(w2),                             # (L, Hm, D) bf16
        "b2": jnp.zeros((L, 1, d_model), f32),
    }


# ---------------------------------------------------------------------------
# Full forward.
# ---------------------------------------------------------------------------
def vit_forward(x, params, *, kernel_size, num_heads, num_classes):
    patches = patchify(x, kernel_size).astype(jnp.bfloat16)   # (B, N, P) bf16 (halve DMA)
    B, N, P = patches.shape
    D = params["wp"].shape[1]
    S = N + 1
    S_pad = ((S + 7) // 8) * 8                                 # sublane-aligned sequence
    L = params["wqkv"].shape[0]
    C_pad = params["wc"].shape[1]

    pe = sinusoidal_pe(S, D)                                   # max_len=500 >= S
    pe0 = pe[0:1, :]                                           # (1, D) CLS position
    pe1 = pe[1:, :]                                            # (N, D) patch positions

    kernel = functools.partial(vit_kernel, num_heads=num_heads, S=S, S_pad=S_pad)

    def _rep(arr):        # replicated 2-D operand, fetched once
        return pl.BlockSpec(arr.shape, lambda b, li: (0, 0))

    def _per_layer(arr):  # (L, a, b) stacked weight, streamed one layer per step
        return pl.BlockSpec((1,) + arr.shape[1:], lambda b, li: (li, 0, 0))

    args = (patches, params["wp"], params["bp"], params["cls"], pe0, pe1,
            params["ln1_g"], params["ln1_b"], params["wqkv"], params["bqkv"],
            params["wo"], params["bo"], params["ln2_g"], params["ln2_b"],
            params["w1"], params["b1"], params["w2"], params["b2"],
            params["wc"], params["bc"])

    in_specs = [
        pl.BlockSpec((1, N, P), lambda b, li: (b, 0, 0)),      # patches (per batch)
        _rep(params["wp"]), _rep(params["bp"]), _rep(params["cls"]),
        _rep(pe0), _rep(pe1),
        _per_layer(params["ln1_g"]), _per_layer(params["ln1_b"]),
        _per_layer(params["wqkv"]), _per_layer(params["bqkv"]),
        _per_layer(params["wo"]), _per_layer(params["bo"]),
        _per_layer(params["ln2_g"]), _per_layer(params["ln2_b"]),
        _per_layer(params["w1"]), _per_layer(params["b1"]),
        _per_layer(params["w2"]), _per_layer(params["b2"]),
        _rep(params["wc"]), _rep(params["bc"]),
    ]

    out_pad = pl.pallas_call(
        kernel,
        grid=(B, L),
        in_specs=in_specs,
        out_specs=pl.BlockSpec((1, 1, C_pad), lambda b, li: (b, 0, 0)),
        out_shape=jax.ShapeDtypeStruct((B, 1, C_pad), jnp.float32),
        scratch_shapes=[pltpu.VMEM((S_pad, D), jnp.float32)],  # activations, carried over li
        compiler_params=pltpu.CompilerParams(
            dimension_semantics=("parallel", "arbitrary"),     # batch across cores, layers seq
            vmem_limit_bytes=32 * 1024 * 1024),
    )(*args)
    return out_pad[:, 0, :num_classes]


if __name__ == "__main__":
    cfg = dict(kernel_size=4, d_model=32, h_dim_mlp=64, num_heads=4,
               num_enc_layers=2, num_classes=10)
    B, C, H, W = 2, 3, 16, 16

    key = jax.random.PRNGKey(0)
    kx, kp = jax.random.split(key)
    x = jax.random.normal(kx, (B, C, H, W), jnp.float32)
    params = init_params(kp, **cfg)

    out = vit_forward(x, params, kernel_size=cfg["kernel_size"],
                      num_heads=cfg["num_heads"], num_classes=cfg["num_classes"])
    out = jax.block_until_ready(out)
    assert out.shape == (B, cfg["num_classes"]) and out.dtype == jnp.float32
    assert bool(jnp.all(jnp.isfinite(out)))
    print("KERNEL_OK")
</pallas_src>

<mosaic_0001>
module attributes {stable_mosaic.version = 11 : i64} {
  func.func @vit_kernel(%arg0: i32, %arg1: i32, %arg2: memref<1x16x48xbf16, #tpu.memory_space<vmem>>, %arg3: memref<48x32xbf16, #tpu.memory_space<vmem>>, %arg4: memref<1x32xf32, #tpu.memory_space<vmem>>, %arg5: memref<1x32xf32, #tpu.memory_space<vmem>>, %arg6: memref<1x32xf32, #tpu.memory_space<vmem>>, %arg7: memref<16x32xf32, #tpu.memory_space<vmem>>, %arg8: memref<1x1x32xf32, #tpu.memory_space<vmem>>, %arg9: memref<1x1x32xf32, #tpu.memory_space<vmem>>, %arg10: memref<1x32x96xbf16, #tpu.memory_space<vmem>>, %arg11: memref<1x1x96xf32, #tpu.memory_space<vmem>>, %arg12: memref<1x32x32xbf16, #tpu.memory_space<vmem>>, %arg13: memref<1x1x32xf32, #tpu.memory_space<vmem>>, %arg14: memref<1x1x32xf32, #tpu.memory_space<vmem>>, %arg15: memref<1x1x32xf32, #tpu.memory_space<vmem>>, %arg16: memref<1x32x64xbf16, #tpu.memory_space<vmem>>, %arg17: memref<1x1x64xf32, #tpu.memory_space<vmem>>, %arg18: memref<1x64x32xbf16, #tpu.memory_space<vmem>>, %arg19: memref<1x1x32xf32, #tpu.memory_space<vmem>>, %arg20: memref<32x128xbf16, #tpu.memory_space<vmem>>, %arg21: memref<1x128xf32, #tpu.memory_space<vmem>>, %arg22: memref<1x1x128xf32, #tpu.memory_space<vmem>>, %arg23: memref<24x32xf32, #tpu.memory_space<vmem>>) attributes {dimension_semantics = [#tpu.dimension_semantics<parallel>, #tpu.dimension_semantics<arbitrary>], iteration_bounds = array<i64: 2, 2>, scalar_prefetch = 0 : i64, scratch_operands = 1 : i64, tpu.core_type = #tpu.core_type<tc>, window_params = [{transform_indices = @transform_0, window_bounds = array<i64: 1, 16, 48>}, {pipeline_mode = #tpu.pipeline_mode<synchronous>, transform_indices = @transform_1, window_bounds = array<i64: 48, 32>}, {pipeline_mode = #tpu.pipeline_mode<synchronous>, transform_indices = @transform_2, window_bounds = array<i64: 1, 32>}, {pipeline_mode = #tpu.pipeline_mode<synchronous>, transform_indices = @transform_3, window_bounds = array<i64: 1, 32>}, {pipeline_mode = #tpu.pipeline_mode<synchronous>, transform_indices = @transform_4, window_bounds = array<i64: 1, 32>}, {pipeline_mode = #tpu.pipeline_mode<synchronous>, transform_indices = @transform_5, window_bounds = array<i64: 16, 32>}, {transform_indices = @transform_6, window_bounds = array<i64: 1, 1, 32>}, {transform_indices = @transform_7, window_bounds = array<i64: 1, 1, 32>}, {transform_indices = @transform_8, window_bounds = array<i64: 1, 32, 96>}, {transform_indices = @transform_9, window_bounds = array<i64: 1, 1, 96>}, {transform_indices = @transform_10, window_bounds = array<i64: 1, 32, 32>}, {transform_indices = @transform_11, window_bounds = array<i64: 1, 1, 32>}, {transform_indices = @transform_12, window_bounds = array<i64: 1, 1, 32>}, {transform_indices = @transform_13, window_bounds = array<i64: 1, 1, 32>}, {transform_indices = @transform_14, window_bounds = array<i64: 1, 32, 64>}, {transform_indices = @transform_15, window_bounds = array<i64: 1, 1, 64>}, {transform_indices = @transform_16, window_bounds = array<i64: 1, 64, 32>}, {transform_indices = @transform_17, window_bounds = array<i64: 1, 1, 32>}, {pipeline_mode = #tpu.pipeline_mode<synchronous>, transform_indices = @transform_18, window_bounds = array<i64: 32, 128>}, {pipeline_mode = #tpu.pipeline_mode<synchronous>, transform_indices = @transform_19, window_bounds = array<i64: 1, 128>}, {transform_indices = @transform_20, window_bounds = array<i64: 1, 1, 128>}]} {
    %c0_i32 = arith.constant 0 : i32
    %0 = arith.cmpi eq, %arg1, %c0_i32 : i32
    %1 = arith.extui %0 : i1 to i32
    %c0_i32_0 = arith.constant 0 : i32
    %2 = arith.cmpi ne, %1, %c0_i32_0 : i32
    scf.if %2 {
      %c0_67 = arith.constant 0 : index
      %c0_68 = arith.constant 0 : index
      %c0_69 = arith.constant 0 : index
      %172 = vector.load %arg2[%c0_67, %c0_68, %c0_69] : memref<1x16x48xbf16, #tpu.memory_space<vmem>>, vector<1x16x48xbf16>
      %173 = vector.shape_cast %172 : vector<1x16x48xbf16> to vector<16x48xbf16>
      %c0_70 = arith.constant 0 : index
      %c0_71 = arith.constant 0 : index
      %174 = vector.load %arg3[%c0_70, %c0_71] : memref<48x32xbf16, #tpu.memory_space<vmem>>, vector<48x32xbf16>
      %cst_72 = arith.constant dense<0.000000e+00> : vector<16x32xf32>
      %175 = tpu.matmul %173, %174, %cst_72 {dimension_numbers = #tpu.dot_dimension_numbers<[1], [0], [0], [1], [0, 0, 1, 1], [], []>} : vector<16x48xbf16>, vector<48x32xbf16>, vector<16x32xf32> -> vector<16x32xf32>
      %c0_73 = arith.constant 0 : index
      %c0_74 = arith.constant 0 : index
      %176 = vector.load %arg4[%c0_73, %c0_74] : memref<1x32xf32, #tpu.memory_space<vmem>>, vector<1x32xf32>
      %177 = vector.broadcast %176 : vector<1x32xf32> to vector<16x32xf32>
      %178 = arith.addf %175, %177 : vector<16x32xf32>
      %c0_75 = arith.constant 0 : index
      %c0_76 = arith.constant 0 : index
      %179 = vector.load %arg5[%c0_75, %c0_76] : memref<1x32xf32, #tpu.memory_space<vmem>>, vector<1x32xf32>
      %c0_77 = arith.constant 0 : index
      %c0_78 = arith.constant 0 : index
      %180 = vector.load %arg6[%c0_77, %c0_78] : memref<1x32xf32, #tpu.memory_space<vmem>>, vector<1x32xf32>
      %181 = arith.addf %179, %180 : vector<1x32xf32>
      %c0_79 = arith.constant 0 : index
      %c0_80 = arith.constant 0 : index
      %182 = vector.load %arg7[%c0_79, %c0_80] : memref<16x32xf32, #tpu.memory_space<vmem>>, vector<16x32xf32>
      %183 = arith.addf %178, %182 : vector<16x32xf32>
      %cst_81 = arith.constant 0.000000e+00 : f32
      %184 = vector.broadcast %cst_81 : f32 to vector<7x32xf32>
      %185 = tpu.concatenate %181, %183, %184 in 0 : vector<1x32xf32>, vector<16x32xf32>, vector<7x32xf32> -> vector<24x32xf32>
      %c0_82 = arith.constant 0 : index
      %c0_83 = arith.constant 0 : index
      %186 = vector.load %arg23[%c0_82, %c0_83] : memref<24x32xf32, #tpu.memory_space<vmem>>, vector<24x32xf32>
      tpu.vector_store %arg23[%c0_82, %c0_83], %185 {strides = array<i32>} : memref<24x32xf32, #tpu.memory_space<vmem>>, vector<24x32xf32>,
    } else {
    }
    %c0 = arith.constant 0 : index
    %c0_1 = arith.constant 0 : index
    %3 = vector.load %arg23[%c0, %c0_1] : memref<24x32xf32, #tpu.memory_space<vmem>>, vector<24x32xf32>
    %4 = tpu.iota {dimensions = array<i32: 1>} : vector<1x24xi32>
    %c17_i32 = arith.constant 17 : i32
    %5 = vector.broadcast %c17_i32 : i32 to vector<1x24xi32>
    %6 = arith.cmpi slt, %4, %5 : vector<1x24xi32>
    %cst = arith.constant 0.000000e+00 : f32
    %cst_2 = arith.constant -1.000000e+30 : f32
    %7 = vector.broadcast %cst : f32 to vector<1x24xf32>
    %8 = vector.broadcast %cst_2 : f32 to vector<1x24xf32>
    %9 = arith.select %6, %7, %8 : vector<1x24xi1>, vector<1x24xf32>
    %c0_3 = arith.constant 0 : index
    %c0_4 = arith.constant 0 : index
    %c0_5 = arith.constant 0 : index
    %10 = vector.load %arg8[%c0_3, %c0_4, %c0_5] : memref<1x1x32xf32, #tpu.memory_space<vmem>>, vector<1x1x32xf32>
    %11 = vector.shape_cast %10 : vector<1x1x32xf32> to vector<1x32xf32>
    %c0_6 = arith.constant 0 : index
    %c0_7 = arith.constant 0 : index
    %c0_8 = arith.constant 0 : index
    %12 = vector.load %arg9[%c0_6, %c0_7, %c0_8] : memref<1x1x32xf32, #tpu.memory_space<vmem>>, vector<1x1x32xf32>
    %13 = vector.shape_cast %12 : vector<1x1x32xf32> to vector<1x32xf32>
    %cst_9 = arith.constant dense<0.000000e+00> : vector<24xf32>
    %14 = vector.multi_reduction <add>, %3, %cst_9 [1] : vector<24x32xf32> to vector<24xf32>
    %15 = vector.shape_cast %14 : vector<24xf32> to vector<24x1xf32>
    %cst_10 = arith.constant 3.200000e+01 : f32
    %16 = vector.broadcast %cst_10 : f32 to vector<24x1xf32>
    %17 = arith.divf %15, %16 : vector<24x1xf32>
    %18 = arith.mulf %3, %3 : vector<24x32xf32>
    %cst_11 = arith.constant dense<0.000000e+00> : vector<24xf32>
    %19 = vector.multi_reduction <add>, %18, %cst_11 [1] : vector<24x32xf32> to vector<24xf32>
    %20 = vector.shape_cast %19 : vector<24xf32> to vector<24x1xf32>
    %cst_12 = arith.constant 3.200000e+01 : f32
    %21 = vector.broadcast %cst_12 : f32 to vector<24x1xf32>
    %22 = arith.divf %20, %21 : vector<24x1xf32>
    %23 = arith.mulf %17, %17 : vector<24x1xf32>
    %24 = arith.subf %22, %23 : vector<24x1xf32>
    %cst_13 = arith.constant 0.000000e+00 : f32
    %25 = vector.broadcast %cst_13 : f32 to vector<24x1xf32>
    %26 = arith.maximumf %24, %25 : vector<24x1xf32>
    %27 = vector.broadcast %17 : vector<24x1xf32> to vector<24x32xf32>
    %28 = arith.subf %3, %27 : vector<24x32xf32>
    %cst_14 = arith.constant 9.99999974E-6 : f32
    %29 = vector.broadcast %cst_14 : f32 to vector<24x1xf32>
    %30 = arith.addf %26, %29 : vector<24x1xf32>
    %31 = math.rsqrt %30 : vector<24x1xf32>
    %32 = vector.broadcast %31 : vector<24x1xf32> to vector<24x32xf32>
    %33 = arith.mulf %28, %32 : vector<24x32xf32>
    %34 = vector.broadcast %11 : vector<1x32xf32> to vector<24x32xf32>
    %35 = arith.mulf %33, %34 : vector<24x32xf32>
    %36 = vector.broadcast %13 : vector<1x32xf32> to vector<24x32xf32>
    %37 = arith.addf %35, %36 : vector<24x32xf32>
    %38 = arith.truncf %37 : vector<24x32xf32> to vector<24x32xbf16>
    %c0_15 = arith.constant 0 : index
    %c0_16 = arith.constant 0 : index
    %c0_17 = arith.constant 0 : index
    %39 = vector.load %arg10[%c0_15, %c0_16, %c0_17] : memref<1x32x96xbf16, #tpu.memory_space<vmem>>, vector<1x32x96xbf16>
    %40 = vector.shape_cast %39 : vector<1x32x96xbf16> to vector<32x96xbf16>
    %cst_18 = arith.constant dense<0.000000e+00> : vector<24x96xf32>
    %41 = tpu.matmul %38, %40, %cst_18 {dimension_numbers = #tpu.dot_dimension_numbers<[1], [0], [0], [1], [0, 0, 1, 1], [], []>} : vector<24x32xbf16>, vector<32x96xbf16>, vector<24x96xf32> -> vector<24x96xf32>
    %c0_19 = arith.constant 0 : index
    %c0_20 = arith.constant 0 : index
    %c0_21 = arith.constant 0 : index
    %42 = vector.load %arg11[%c0_19, %c0_20, %c0_21] : memref<1x1x96xf32, #tpu.memory_space<vmem>>, vector<1x1x96xf32>
    %43 = vector.shape_cast %42 : vector<1x1x96xf32> to vector<1x96xf32>
    %44 = vector.broadcast %43 : vector<1x96xf32> to vector<24x96xf32>
    %45 = arith.addf %41, %44 : vector<24x96xf32>
    %46 = arith.truncf %45 : vector<24x96xf32> to vector<24x96xbf16>
    %47 = vector.extract_strided_slice %46 {offsets = [0, 0], sizes = [24, 8], strides = [1, 1]} : vector<24x96xbf16> to vector<24x8xbf16>
    %48 = vector.extract_strided_slice %46 {offsets = [0, 8], sizes = [24, 8], strides = [1, 1]} : vector<24x96xbf16> to vector<24x8xbf16>
    %49 = vector.extract_strided_slice %46 {offsets = [0, 16], sizes = [24, 8], strides = [1, 1]} : vector<24x96xbf16> to vector<24x8xbf16>
    %50 = vector.extract_strided_slice %46 {offsets = [0, 24], sizes = [24, 8], strides = [1, 1]} : vector<24x96xbf16> to vector<24x8xbf16>
    %51 = vector.shape_cast %47 : vector<24x8xbf16> to vector<1x24x8xbf16>
    %52 = vector.shape_cast %48 : vector<24x8xbf16> to vector<1x24x8xbf16>
    %53 = vector.shape_cast %49 : vector<24x8xbf16> to vector<1x24x8xbf16>
    %54 = vector.shape_cast %50 : vector<24x8xbf16> to vector<1x24x8xbf16>
    %55 = tpu.concatenate %51, %52, %53, %54 in 0 : vector<1x24x8xbf16>, vector<1x24x8xbf16>, vector<1x24x8xbf16>, vector<1x24x8xbf16> -> vector<4x24x8xbf16>
    %56 = vector.extract_strided_slice %46 {offsets = [0, 32], sizes = [24, 8], strides = [1, 1]} : vector<24x96xbf16> to vector<24x8xbf16>
    %57 = vector.extract_strided_slice %46 {offsets = [0, 40], sizes = [24, 8], strides = [1, 1]} : vector<24x96xbf16> to vector<24x8xbf16>
    %58 = vector.extract_strided_slice %46 {offsets = [0, 48], sizes = [24, 8], strides = [1, 1]} : vector<24x96xbf16> to vector<24x8xbf16>
    %59 = vector.extract_strided_slice %46 {offsets = [0, 56], sizes = [24, 8], strides = [1, 1]} : vector<24x96xbf16> to vector<24x8xbf16>
    %60 = vector.shape_cast %56 : vector<24x8xbf16> to vector<1x24x8xbf16>
    %61 = vector.shape_cast %57 : vector<24x8xbf16> to vector<1x24x8xbf16>
    %62 = vector.shape_cast %58 : vector<24x8xbf16> to vector<1x24x8xbf16>
    %63 = vector.shape_cast %59 : vector<24x8xbf16> to vector<1x24x8xbf16>
    %64 = tpu.concatenate %60, %61, %62, %63 in 0 : vector<1x24x8xbf16>, vector<1x24x8xbf16>, vector<1x24x8xbf16>, vector<1x24x8xbf16> -> vector<4x24x8xbf16>
    %65 = vector.extract_strided_slice %46 {offsets = [0, 64], sizes = [24, 8], strides = [1, 1]} : vector<24x96xbf16> to vector<24x8xbf16>
    %66 = vector.extract_strided_slice %46 {offsets = [0, 72], sizes = [24, 8], strides = [1, 1]} : vector<24x96xbf16> to vector<24x8xbf16>
    %67 = vector.extract_strided_slice %46 {offsets = [0, 80], sizes = [24, 8], strides = [1, 1]} : vector<24x96xbf16> to vector<24x8xbf16>
    %68 = vector.extract_strided_slice %46 {offsets = [0, 88], sizes = [24, 8], strides = [1, 1]} : vector<24x96xbf16> to vector<24x8xbf16>
    %69 = vector.shape_cast %65 : vector<24x8xbf16> to vector<1x24x8xbf16>
    %70 = vector.shape_cast %66 : vector<24x8xbf16> to vector<1x24x8xbf16>
    %71 = vector.shape_cast %67 : vector<24x8xbf16> to vector<1x24x8xbf16>
    %72 = vector.shape_cast %68 : vector<24x8xbf16> to vector<1x24x8xbf16>
    %73 = tpu.concatenate %69, %70, %71, %72 in 0 : vector<1x24x8xbf16>, vector<1x24x8xbf16>, vector<1x24x8xbf16>, vector<1x24x8xbf16> -> vector<4x24x8xbf16>
    "tpu.trace_start"() <{level = 10 : i32, message = "hqd,hkd->hqk"}> : () -> ()
    %cst_22 = arith.constant dense<0.000000e+00> : vector<4x24x24xf32>
    %74 = tpu.matmul %55, %64, %cst_22 {dimension_numbers = #tpu.dot_dimension_numbers<[2], [2], [1], [1], [0, 0, 0, 1, 1, 1], [0], [0]>} : vector<4x24x8xbf16>, vector<4x24x8xbf16>, vector<4x24x24xf32> -> vector<4x24x24xf32>
    "tpu.trace_stop"() : () -> ()
    %cst_23 = arith.constant 0.353553385 : f32
    %75 = vector.broadcast %cst_23 : f32 to vector<4x24x24xf32>
    %76 = arith.mulf %74, %75 : vector<4x24x24xf32>
    %77 = vector.shape_cast %9 : vector<1x24xf32> to vector<1x1x24xf32>
    %78 = vector.broadcast %77 : vector<1x1x24xf32> to vector<4x24x24xf32>
    %79 = arith.addf %76, %78 : vector<4x24x24xf32>
    %cst_24 = arith.constant dense<0xFF800000> : vector<4x24xf32>
    %80 = vector.multi_reduction <maximumf>, %79, %cst_24 [2] : vector<4x24x24xf32> to vector<4x24xf32>
    %81 = vector.shape_cast %80 : vector<4x24xf32> to vector<4x24x1xf32>
    %82 = vector.broadcast %81 : vector<4x24x1xf32> to vector<4x24x24xf32>
    %83 = arith.subf %79, %82 : vector<4x24x24xf32>
    %84 = math.exp %83 : vector<4x24x24xf32>
    %cst_25 = arith.constant dense<0.000000e+00> : vector<4x24xf32>
    %85 = vector.multi_reduction <add>, %84, %cst_25 [2] : vector<4x24x24xf32> to vector<4x24xf32>
    %86 = vector.shape_cast %85 : vector<4x24xf32> to vector<4x24x1xf32>
    %87 = tpu.reciprocal %86 {approx = true} : vector<4x24x1xf32> -> vector<4x24x1xf32>
    %88 = vector.broadcast %87 : vector<4x24x1xf32> to vector<4x24x24xf32>
    %89 = arith.mulf %84, %88 : vector<4x24x24xf32>
    %90 = arith.truncf %89 : vector<4x24x24xf32> to vector<4x24x24xbf16>
    "tpu.trace_start"() <{level = 10 : i32, message = "hqk,hkd->hqd"}> : () -> ()
    %cst_26 = arith.constant dense<0.000000e+00> : vector<4x24x8xf32>
    %91 = tpu.matmul %90, %73, %cst_26 {dimension_numbers = #tpu.dot_dimension_numbers<[2], [1], [1], [2], [0, 0, 0, 1, 1, 2], [0], [0]>} : vector<4x24x24xbf16>, vector<4x24x8xbf16>, vector<4x24x8xf32> -> vector<4x24x8xf32>
    "tpu.trace_stop"() : () -> ()
    %92 = vector.extract_strided_slice %91 {offsets = [0, 0, 0], sizes = [1, 24, 8], strides = [1, 1, 1]} : vector<4x24x8xf32> to vector<1x24x8xf32>
    %93 = vector.shape_cast %92 : vector<1x24x8xf32> to vector<24x8xf32>
    %94 = vector.extract_strided_slice %91 {offsets = [1, 0, 0], sizes = [1, 24, 8], strides = [1, 1, 1]} : vector<4x24x8xf32> to vector<1x24x8xf32>
    %95 = vector.shape_cast %94 : vector<1x24x8xf32> to vector<24x8xf32>
    %96 = vector.extract_strided_slice %91 {offsets = [2, 0, 0], sizes = [1, 24, 8], strides = [1, 1, 1]} : vector<4x24x8xf32> to vector<1x24x8xf32>
    %97 = vector.shape_cast %96 : vector<1x24x8xf32> to vector<24x8xf32>
    %98 = vector.extract_strided_slice %91 {offsets = [3, 0, 0], sizes = [1, 24, 8], strides = [1, 1, 1]} : vector<4x24x8xf32> to vector<1x24x8xf32>
    %99 = vector.shape_cast %98 : vector<1x24x8xf32> to vector<24x8xf32>
    %100 = tpu.concatenate %93, %95, %97, %99 in 1 : vector<24x8xf32>, vector<24x8xf32>, vector<24x8xf32>, vector<24x8xf32> -> vector<24x32xf32>
    %101 = arith.truncf %100 : vector<24x32xf32> to vector<24x32xbf16>
    %c0_27 = arith.constant 0 : index
    %c0_28 = arith.constant 0 : index
    %c0_29 = arith.constant 0 : index
    %102 = vector.load %arg12[%c0_27, %c0_28, %c0_29] : memref<1x32x32xbf16, #tpu.memory_space<vmem>>, vector<1x32x32xbf16>
    %103 = vector.shape_cast %102 : vector<1x32x32xbf16> to vector<32x32xbf16>
    %cst_30 = arith.constant dense<0.000000e+00> : vector<24x32xf32>
    %104 = tpu.matmul %101, %103, %cst_30 {dimension_numbers = #tpu.dot_dimension_numbers<[1], [0], [0], [1], [0, 0, 1, 1], [], []>} : vector<24x32xbf16>, vector<32x32xbf16>, vector<24x32xf32> -> vector<24x32xf32>
    %c0_31 = arith.constant 0 : index
    %c0_32 = arith.constant 0 : index
    %c0_33 = arith.constant 0 : index
    %105 = vector.load %arg13[%c0_31, %c0_32, %c0_33] : memref<1x1x32xf32, #tpu.memory_space<vmem>>, vector<1x1x32xf32>
    %106 = vector.shape_cast %105 : vector<1x1x32xf32> to vector<1x32xf32>
    %107 = vector.broadcast %106 : vector<1x32xf32> to vector<24x32xf32>
    %108 = arith.addf %104, %107 : vector<24x32xf32>
    %109 = arith.addf %3, %108 : vector<24x32xf32>
    %c0_34 = arith.constant 0 : index
    %c0_35 = arith.constant 0 : index
    %c0_36 = arith.constant 0 : index
    %110 = vector.load %arg14[%c0_34, %c0_35, %c0_36] : memref<1x1x32xf32, #tpu.memory_space<vmem>>, vector<1x1x32xf32>
    %111 = vector.shape_cast %110 : vector<1x1x32xf32> to vector<1x32xf32>
    %c0_37 = arith.constant 0 : index
    %c0_38 = arith.constant 0 : index
    %c0_39 = arith.constant 0 : index
    %112 = vector.load %arg15[%c0_37, %c0_38, %c0_39] : memref<1x1x32xf32, #tpu.memory_space<vmem>>, vector<1x1x32xf32>
    %113 = vector.shape_cast %112 : vector<1x1x32xf32> to vector<1x32xf32>
    %cst_40 = arith.constant dense<0.000000e+00> : vector<24xf32>
    %114 = vector.multi_reduction <add>, %109, %cst_40 [1] : vector<24x32xf32> to vector<24xf32>
    %115 = vector.shape_cast %114 : vector<24xf32> to vector<24x1xf32>
    %cst_41 = arith.constant 3.200000e+01 : f32
    %116 = vector.broadcast %cst_41 : f32 to vector<24x1xf32>
    %117 = arith.divf %115, %116 : vector<24x1xf32>
    %118 = arith.mulf %109, %109 : vector<24x32xf32>
    %cst_42 = arith.constant dense<0.000000e+00> : vector<24xf32>
    %119 = vector.multi_reduction <add>, %118, %cst_42 [1] : vector<24x32xf32> to vector<24xf32>
    %120 = vector.shape_cast %119 : vector<24xf32> to vector<24x1xf32>
    %cst_43 = arith.constant 3.200000e+01 : f32
    %121 = vector.broadcast %cst_43 : f32 to vector<24x1xf32>
    %122 = arith.divf %120, %121 : vector<24x1xf32>
    %123 = arith.mulf %117, %117 : vector<24x1xf32>
    %124 = arith.subf %122, %123 : vector<24x1xf32>
    %cst_44 = arith.constant 0.000000e+00 : f32
    %125 = vector.broadcast %cst_44 : f32 to vector<24x1xf32>
    %126 = arith.maximumf %124, %125 : vector<24x1xf32>
    %127 = vector.broadcast %117 : vector<24x1xf32> to vector<24x32xf32>
    %128 = arith.subf %109, %127 : vector<24x32xf32>
    %cst_45 = arith.constant 9.99999974E-6 : f32
    %129 = vector.broadcast %cst_45 : f32 to vector<24x1xf32>
    %130 = arith.addf %126, %129 : vector<24x1xf32>
    %131 = math.rsqrt %130 : vector<24x1xf32>
    %132 = vector.broadcast %131 : vector<24x1xf32> to vector<24x32xf32>
    %133 = arith.mulf %128, %132 : vector<24x32xf32>
    %134 = vector.broadcast %111 : vector<1x32xf32> to vector<24x32xf32>
    %135 = arith.mulf %133, %134 : vector<24x32xf32>
    %136 = vector.broadcast %113 : vector<1x32xf32> to vector<24x32xf32>
    %137 = arith.addf %135, %136 : vector<24x32xf32>
    %138 = arith.truncf %137 : vector<24x32xf32> to vector<24x32xbf16>
    %c0_46 = arith.constant 0 : index
    %c0_47 = arith.constant 0 : index
    %c0_48 = arith.constant 0 : index
    %139 = vector.load %arg16[%c0_46, %c0_47, %c0_48] : memref<1x32x64xbf16, #tpu.memory_space<vmem>>, vector<1x32x64xbf16>
    %140 = vector.shape_cast %139 : vector<1x32x64xbf16> to vector<32x64xbf16>
    %cst_49 = arith.constant dense<0.000000e+00> : vector<24x64xf32>
    %141 = tpu.matmul %138, %140, %cst_49 {dimension_numbers = #tpu.dot_dimension_numbers<[1], [0], [0], [1], [0, 0, 1, 1], [], []>} : vector<24x32xbf16>, vector<32x64xbf16>, vector<24x64xf32> -> vector<24x64xf32>
    %c0_50 = arith.constant 0 : index
    %c0_51 = arith.constant 0 : index
    %c0_52 = arith.constant 0 : index
    %142 = vector.load %arg17[%c0_50, %c0_51, %c0_52] : memref<1x1x64xf32, #tpu.memory_space<vmem>>, vector<1x1x64xf32>
    %143 = vector.shape_cast %142 : vector<1x1x64xf32> to vector<1x64xf32>
    %144 = vector.broadcast %143 : vector<1x64xf32> to vector<24x64xf32>
    %145 = arith.addf %141, %144 : vector<24x64xf32>
    %cst_53 = arith.constant 5.000000e-01 : f32
    %146 = vector.broadcast %cst_53 : f32 to vector<24x64xf32>
    %147 = arith.mulf %146, %145 : vector<24x64xf32>
    %cst_54 = arith.constant 4.471500e-02 : f32
    %148 = vector.broadcast %cst_54 : f32 to vector<24x64xf32>
    %149 = arith.mulf %148, %145 : vector<24x64xf32>
    %150 = arith.mulf %149, %145 : vector<24x64xf32>
    %151 = arith.mulf %150, %145 : vector<24x64xf32>
    %152 = arith.addf %145, %151 : vector<24x64xf32>
    %cst_55 = arith.constant 0.797884583 : f32
    %153 = vector.broadcast %cst_55 : f32 to vector<24x64xf32>
    %154 = arith.mulf %153, %152 : vector<24x64xf32>
    %155 = math.tanh %154 : vector<24x64xf32>
    %cst_56 = arith.constant 1.000000e+00 : f32
    %156 = vector.broadcast %cst_56 : f32 to vector<24x64xf32>
    %157 = arith.addf %156, %155 : vector<24x64xf32>
    %158 = arith.mulf %147, %157 : vector<24x64xf32>
    %159 = arith.truncf %158 : vector<24x64xf32> to vector<24x64xbf16>
    %c0_57 = arith.constant 0 : index
    %c0_58 = arith.constant 0 : index
    %c0_59 = arith.constant 0 : index
    %160 = vector.load %arg18[%c0_57, %c0_58, %c0_59] : memref<1x64x32xbf16, #tpu.memory_space<vmem>>, vector<1x64x32xbf16>
    %161 = vector.shape_cast %160 : vector<1x64x32xbf16> to vector<64x32xbf16>
    %cst_60 = arith.constant dense<0.000000e+00> : vector<24x32xf32>
    %162 = tpu.matmul %159, %161, %cst_60 {dimension_numbers = #tpu.dot_dimension_numbers<[1], [0], [0], [1], [0, 0, 1, 1], [], []>} : vector<24x64xbf16>, vector<64x32xbf16>, vector<24x32xf32> -> vector<24x32xf32>
    %c0_61 = arith.constant 0 : index
    %c0_62 = arith.constant 0 : index
    %c0_63 = arith.constant 0 : index
    %163 = vector.load %arg19[%c0_61, %c0_62, %c0_63] : memref<1x1x32xf32, #tpu.memory_space<vmem>>, vector<1x1x32xf32>
    %164 = vector.shape_cast %163 : vector<1x1x32xf32> to vector<1x32xf32>
    %165 = vector.broadcast %164 : vector<1x32xf32> to vector<24x32xf32>
    %166 = arith.addf %162, %165 : vector<24x32xf32>
    %167 = arith.addf %109, %166 : vector<24x32xf32>
    %c0_64 = arith.constant 0 : index
    %c0_65 = arith.constant 0 : index
    %168 = vector.load %arg23[%c0_64, %c0_65] : memref<24x32xf32, #tpu.memory_space<vmem>>, vector<24x32xf32>
    tpu.vector_store %arg23[%c0_64, %c0_65], %167 {strides = array<i32>} : memref<24x32xf32, #tpu.memory_space<vmem>>, vector<24x32xf32>,
    %c1_i32 = arith.constant 1 : i32
    %169 = arith.cmpi eq, %arg1, %c1_i32 : i32
    %170 = arith.extui %169 : i1 to i32
    %c0_i32_66 = arith.constant 0 : i32
    %171 = arith.cmpi ne, %170, %c0_i32_66 : i32
    scf.if %171 {
      %172 = vector.extract_strided_slice %167 {offsets = [0, 0], sizes = [1, 32], strides = [1, 1]} : vector<24x32xf32> to vector<1x32xf32>
      %173 = arith.truncf %172 : vector<1x32xf32> to vector<1x32xbf16>
      %c0_67 = arith.constant 0 : index
      %c0_68 = arith.constant 0 : index
      %174 = vector.load %arg20[%c0_67, %c0_68] : memref<32x128xbf16, #tpu.memory_space<vmem>>, vector<32x128xbf16>
      %cst_69 = arith.constant dense<0.000000e+00> : vector<1x128xf32>
      %175 = tpu.matmul %173, %174, %cst_69 {dimension_numbers = #tpu.dot_dimension_numbers<[1], [0], [0], [1], [0, 0, 1, 1], [], []>} : vector<1x32xbf16>, vector<32x128xbf16>, vector<1x128xf32> -> vector<1x128xf32>
      %c0_70 = arith.constant 0 : index
      %c0_71 = arith.constant 0 : index
      %176 = vector.load %arg21[%c0_70, %c0_71] : memref<1x128xf32, #tpu.memory_space<vmem>>, vector<1x128xf32>
      %177 = arith.addf %175, %176 : vector<1x128xf32>
      %178 = vector.shape_cast %177 : vector<1x128xf32> to vector<1x1x128xf32>
      %c0_72 = arith.constant 0 : index
      %c0_73 = arith.constant 0 : index
      %c0_74 = arith.constant 0 : index
      %179 = vector.load %arg22[%c0_72, %c0_73, %c0_74] : memref<1x1x128xf32, #tpu.memory_space<vmem>>, vector<1x1x128xf32>
      tpu.vector_store %arg22[%c0_72, %c0_73, %c0_74], %178 {strides = array<i32>} : memref<1x1x128xf32, #tpu.memory_space<vmem>>, vector<1x1x128xf32>,
    } else {
    }
    return
  }
  func.func @transform_0(%arg0: i32, %arg1: i32) -> (i32, i32, i32) {
    %c0_i32 = arith.constant 0 : i32
    %c0_i32_0 = arith.constant 0 : i32
    %c0_i32_1 = arith.constant 0 : i32
    return %arg0, %c0_i32, %c0_i32_0 : i32, i32, i32
  }
  func.func @transform_1(%arg0: i32, %arg1: i32) -> (i32, i32) {
    %c0_i32 = arith.constant 0 : i32
    %c0_i32_0 = arith.constant 0 : i32
    %c0_i32_1 = arith.constant 0 : i32
    return %c0_i32, %c0_i32_0 : i32, i32
  }
  func.func @transform_2(%arg0: i32, %arg1: i32) -> (i32, i32) {
    %c0_i32 = arith.constant 0 : i32
    %c0_i32_0 = arith.constant 0 : i32
    %c0_i32_1 = arith.constant 0 : i32
    return %c0_i32, %c0_i32_0 : i32, i32
  }
  func.func @transform_3(%arg0: i32, %arg1: i32) -> (i32, i32) {
    %c0_i32 = arith.constant 0 : i32
    %c0_i32_0 = arith.constant 0 : i32
    %c0_i32_1 = arith.constant 0 : i32
    return %c0_i32, %c0_i32_0 : i32, i32
  }
  func.func @transform_4(%arg0: i32, %arg1: i32) -> (i32, i32) {
    %c0_i32 = arith.constant 0 : i32
    %c0_i32_0 = arith.constant 0 : i32
    %c0_i32_1 = arith.constant 0 : i32
    return %c0_i32, %c0_i32_0 : i32, i32
  }
  func.func @transform_5(%arg0: i32, %arg1: i32) -> (i32, i32) {
    %c0_i32 = arith.constant 0 : i32
    %c0_i32_0 = arith.constant 0 : i32
    %c0_i32_1 = arith.constant 0 : i32
    return %c0_i32, %c0_i32_0 : i32, i32
  }
  func.func @transform_6(%arg0: i32, %arg1: i32) -> (i32, i32, i32) {
    %c0_i32 = arith.constant 0 : i32
    %c0_i32_0 = arith.constant 0 : i32
    %c0_i32_1 = arith.constant 0 : i32
    return %arg1, %c0_i32, %c0_i32_0 : i32, i32, i32
  }
  func.func @transform_7(%arg0: i32, %arg1: i32) -> (i32, i32, i32) {
    %c0_i32 = arith.constant 0 : i32
    %c0_i32_0 = arith.constant 0 : i32
    %c0_i32_1 = arith.constant 0 : i32
    return %arg1, %c0_i32, %c0_i32_0 : i32, i32, i32
  }
  func.func @transform_8(%arg0: i32, %arg1: i32) -> (i32, i32, i32) {
    %c0_i32 = arith.constant 0 : i32
    %c0_i32_0 = arith.constant 0 : i32
    %c0_i32_1 = arith.constant 0 : i32
    return %arg1, %c0_i32, %c0_i32_0 : i32, i32, i32
  }
  func.func @transform_9(%arg0: i32, %arg1: i32) -> (i32, i32, i32) {
    %c0_i32 = arith.constant 0 : i32
    %c0_i32_0 = arith.constant 0 : i32
    %c0_i32_1 = arith.constant 0 : i32
    return %arg1, %c0_i32, %c0_i32_0 : i32, i32, i32
  }
  func.func @transform_10(%arg0: i32, %arg1: i32) -> (i32, i32, i32) {
    %c0_i32 = arith.constant 0 : i32
    %c0_i32_0 = arith.constant 0 : i32
    %c0_i32_1 = arith.constant 0 : i32
    return %arg1, %c0_i32, %c0_i32_0 : i32, i32, i32
  }
  func.func @transform_11(%arg0: i32, %arg1: i32) -> (i32, i32, i32) {
    %c0_i32 = arith.constant 0 : i32
    %c0_i32_0 = arith.constant 0 : i32
    %c0_i32_1 = arith.constant 0 : i32
    return %arg1, %c0_i32, %c0_i32_0 : i32, i32, i32
  }
  func.func @transform_12(%arg0: i32, %arg1: i32) -> (i32, i32, i32) {
    %c0_i32 = arith.constant 0 : i32
    %c0_i32_0 = arith.constant 0 : i32
    %c0_i32_1 = arith.constant 0 : i32
    return %arg1, %c0_i32, %c0_i32_0 : i32, i32, i32
  }
  func.func @transform_13(%arg0: i32, %arg1: i32) -> (i32, i32, i32) {
    %c0_i32 = arith.constant 0 : i32
    %c0_i32_0 = arith.constant 0 : i32
    %c0_i32_1 = arith.constant 0 : i32
    return %arg1, %c0_i32, %c0_i32_0 : i32, i32, i32
  }
  func.func @transform_14(%arg0: i32, %arg1: i32) -> (i32, i32, i32) {
    %c0_i32 = arith.constant 0 : i32
    %c0_i32_0 = arith.constant 0 : i32
    %c0_i32_1 = arith.constant 0 : i32
    return %arg1, %c0_i32, %c0_i32_0 : i32, i32, i32
  }
  func.func @transform_15(%arg0: i32, %arg1: i32) -> (i32, i32, i32) {
    %c0_i32 = arith.constant 0 : i32
    %c0_i32_0 = arith.constant 0 : i32
    %c0_i32_1 = arith.constant 0 : i32
    return %arg1, %c0_i32, %c0_i32_0 : i32, i32, i32
  }
  func.func @transform_16(%arg0: i32, %arg1: i32) -> (i32, i32, i32) {
    %c0_i32 = arith.constant 0 : i32
    %c0_i32_0 = arith.constant 0 : i32
    %c0_i32_1 = arith.constant 0 : i32
    return %arg1, %c0_i32, %c0_i32_0 : i32, i32, i32
  }
  func.func @transform_17(%arg0: i32, %arg1: i32) -> (i32, i32, i32) {
    %c0_i32 = arith.constant 0 : i32
    %c0_i32_0 = arith.constant 0 : i32
    %c0_i32_1 = arith.constant 0 : i32
    return %arg1, %c0_i32, %c0_i32_0 : i32, i32, i32
  }
  func.func @transform_18(%arg0: i32, %arg1: i32) -> (i32, i32) {
    %c0_i32 = arith.constant 0 : i32
    %c0_i32_0 = arith.constant 0 : i32
    %c0_i32_1 = arith.constant 0 : i32
    return %c0_i32, %c0_i32_0 : i32, i32
  }
  func.func @transform_19(%arg0: i32, %arg1: i32) -> (i32, i32) {
    %c0_i32 = arith.constant 0 : i32
    %c0_i32_0 = arith.constant 0 : i32
    %c0_i32_1 = arith.constant 0 : i32
    return %c0_i32, %c0_i32_0 : i32, i32
  }
  func.func @transform_20(%arg0: i32, %arg1: i32) -> (i32, i32, i32) {
    %c0_i32 = arith.constant 0 : i32
    %c0_i32_0 = arith.constant 0 : i32
    %c0_i32_1 = arith.constant 0 : i32
    return %arg0, %c0_i32, %c0_i32_0 : i32, i32, i32
  }
}

</mosaic_0001>

<bundles_post_ra>
// kernel: tpu_custom_call.1
= control target key start
LH: loop header
LB: loop body
LE: loop exit
PB: predicated region body
PF: predicated region fallthrough
CT: control target
= control target key end

     0   :  { %s4264_s0 = inlined_call_operand.vmem [shape: bf16[2,16,48], index: 0, kind: input, shape index: {}]   ;;  %s4265_s1 = inlined_call_operand.vmem [shape: bf16[48,32], index: 1, kind: input, shape index: {}]   ;;  %s4266_s2 = inlined_call_operand.hbm [shape: f32[1,32], index: 2, kind: input, shape index: {}]   ;;  %s4267_s3 = inlined_call_operand.hbm [shape: f32[1,32], index: 3, kind: input, shape index: {}]   ;;  %s4268_s4 = inlined_call_operand.hbm [shape: f32[1,32], index: 4, kind: input, shape index: {}]   ;;  %s4269_s5 = inlined_call_operand.hbm [shape: f32[16,32], index: 5, kind: input, shape index: {}]   ;;  %s4270_s6 = inlined_call_operand.vmem [shape: f32[2,1,32], index: 6, kind: input, shape index: {}]   ;;  %s4271_s7 = inlined_call_operand.hbm [shape: f32[2,1,32], index: 7, kind: input, shape index: {}]   ;;  %s4272_s8 = inlined_call_operand.vmem [shape: bf16[2,32,96], index: 8, kind: input, shape index: {}]   ;;  %s4273_s9 = inlined_call_operand.vmem [shape: f32[2,1,96], index: 9, kind: input, shape index: {}]   ;;  %s4274_s10 = inlined_call_operand.vmem [shape: bf16[2,32,32], index: 10, kind: input, shape index: {}]   ;;  %s4275_s11 = inlined_call_operand.vmem [shape: f32[2,1,32], index: 11, kind: input, shape index: {}]   ;;  %s4276_s12 = inlined_call_operand.vmem [shape: f32[2,1,32], index: 12, kind: input, shape index: {}]   ;;  %s4277_s13 = inlined_call_operand.vmem [shape: f32[2,1,32], index: 13, kind: input, shape index: {}]   ;;  %s4278_s14 = inlined_call_operand.vmem [shape: bf16[2,32,64], index: 14, kind: input, shape index: {}]   ;;  %s4279_s15 = inlined_call_operand.vmem [shape: f32[2,1,64], index: 15, kind: input, shape index: {}]   ;;  %s4280_s16 = inlined_call_operand.vmem [shape: bf16[2,64,32], index: 16, kind: input, shape index: {}]   ;;  %s4281_s17 = inlined_call_operand.vmem [shape: f32[2,1,32], index: 17, kind: input, shape index: {}]   ;;  %s4282_s18 = inlined_call_operand.vmem [shape: bf16[32,128], index: 18, kind: input, shape index: {}]   ;;  %s4283_s19 = inlined_call_operand.vmem [shape: f32[1,128], index: 19, kind: input, shape index: {}]   ;;  %s4284_s20 = inlined_call_operand.hbm [shape: f32[2,1,128], index: 20, kind: output, shape index: {}]  }
   0x1   :  { %4310 = sst [smem:[#allocation31_spill]] %s4264_s0 }
   0x2   :  { %4311 = sst [smem:[#allocation32_spill]] %s4265_s1 }
   0x3   :  { %4312 = sst [smem:[#allocation33_spill]] %s4266_s2 }
   0x4   :  { %4313 = sst [smem:[#allocation34_spill]] %s4267_s3 }
   0x5   :  { %4314 = sst [smem:[#allocation35_spill]] %s4268_s4 }
   0x6   :  { %4315 = sst [smem:[#allocation36_spill]] %s4269_s5 }
   0x7   :  { %4316 = sst [smem:[#allocation37_spill]] %s4271_s7 }
   0x8   :  { %4317 = sst [smem:[#allocation38_spill]] %s4272_s8 }
   0x9   :  { %4318 = sst [smem:[#allocation39_spill]] %s4273_s9 }
   0xa   :  { %4319 = sst [smem:[#allocation40_spill]] %s4274_s10 }
   0xb   :  { %4320 = sst [smem:[#allocation41_spill]] %s4275_s11 }
   0xc   :  { %4321 = sst [smem:[#allocation42_spill]] %s4276_s12 }
   0xd   :  { %4322 = sst [smem:[#allocation43_spill]] %s4277_s13 }
   0xe   :  { %4323 = sst [smem:[#allocation44_spill]] %s4278_s14 }
   0xf   :  { %4324 = sst [smem:[#allocation45_spill]] %s4279_s15 }
  0x10   :  { %4325 = sst [smem:[#allocation46_spill]] %s4280_s16 }
  0x11   :  { %4326 = sst [smem:[#allocation47_spill]] %s4281_s17 }
  0x12   :  { %4327 = sst [smem:[#allocation48_spill]] %s4282_s18 }
  0x13   :  { %4328 = sst [smem:[#allocation49_spill]] %s4283_s19 }
  0x14   :  { %4329 = sst [smem:[#allocation50_spill]] %s4284_s20 }
  0x15   :  { %25 = vsyncpa [#allocation4], 0 }
  0x16   :  { %26 = vsyncpa [#allocation7], 0 }
  0x17   :  { %27 = vsyncpa [#allocation10], 0 }
  0x18   :  { %28 = vsyncpa [#allocation5], 0 }
  0x19   :  { %30 = vsyncpa [#allocation5 + $0x1], 0  ;;  %s3503_s1 = smov 0   ;;  %s3505_s22 = smov 0  }
  0x1a   :  { %s3507_s23 = smov 0   ;;  %s3509_s24 = smov 0  }
  0x1b   :  { %s3511_s2 = smov 0   ;;  %s3513_s25 = smov 0  }
  0x1c   :  { %s3515_s3 = smov 0   ;;  %s3517_s26 = smov 0  }
  0x1d   :  { %s3519_s27 = smov 0   ;;  %s3521_s28 = smov 0  }
  0x1e   :  { %s3523_s4 = smov 0  }
  0x1f LB: > { %4330 = sst [smem:[#allocation18_spill]] %s3335_s1  ;;  %s3559_s29 = sadd.s32 4294967295, %s3375_s4   ;;  %s3375_s4 = sphi %s3523_s4, %s36_s4   ;;  %s3371_s28 = sphi %s3521_s28, %s4404_s28   ;;  %s3367_s27 = sphi %s3519_s27, %s4403_s27   ;;  %s3363_s26 = sphi %s3517_s26, %s4402_s26   ;;  %s3359_s3 = sphi %s3515_s3, %s4407_s3   ;;  %s3355_s25 = sphi %s3513_s25, %s4400_s25   ;;  %s3351_s2 = sphi %s3511_s2, %s4399_s2   ;;  %s3347_s24 = sphi %s3509_s24, %s4398_s24   ;;  %s3343_s23 = sphi %s3507_s23, %s4397_s23   ;;  %s3339_s22 = sphi %s3505_s22, %s4406_s22   ;;  %s3335_s1 = sphi %s3503_s1, %s4405_s1  }
  0x20   : > { %4331 = sst [smem:[#allocation19_spill]] %s3343_s23  ;;  %s2573_s30 = sadd.s32 4294967294, %s3375_s4  }
  0x21   : > { %4332 = sst [smem:[#allocation20_spill]] %s3351_s2  ;;  %p4295_p0 = scmp.eq.s32.totalorder %s3559_s29, 0 }
  0x22   : > { %4333 = sst [smem:[#allocation21_spill]] %s3355_s25  ;;  %p550_p1 = scmp.ne.s32.totalorder %s3343_s23, %s3339_s22 }
  0x23   : > { %4334 = sst [smem:[#allocation22_spill]] %s3367_s27  ;;  %p551_p2 = scmp.eq.s32.totalorder %s3559_s29, 3 }
  0x24   : > { %4335 = sst [smem:[#allocation23_spill]] %s3371_s28  ;;  %p556_p3 = scmp.ne.s32.totalorder %s3339_s22, %s3335_s1 }
  0x25   : > { %4336 = sst [smem:[#allocation24_spill]] %s3375_s4  ;;  %p557_p4 = scmp.eq.s32.totalorder %s2573_s30, 3 }
  0x26   : > { %p2574_p5 = scmp.ge.s32.totalorder %s3375_s4, 1  ;;  %p3569_p6 = por %p551_p2, %p550_p1 }
  0x27   : > { %p564_p7 = scmp.lt.s32.totalorder %s3375_s4, 5  ;;  %p3574_p8 = por %p557_p4, %p556_p3 }
  0x28   : > { %s4337_s0 = scalar_select %p3569_p6, 1, 0 }
  0x29   : > { %s4339_s21 = scalar_select %p3574_p8, 1, 0 }
  0x2a   : > { %4338 = sst [smem:[#allocation25_spill]] %s4337_s0  ;;  %p3578_p9 = pnand %p2574_p5, %p564_p7 }
  0x2b   : > { %4340 = sst [smem:[#allocation26_spill]] %s4339_s21  ;;  %s3377_s19 = smov [#allocation3]  }
  0x2c   : > { %s4341_s20 = scalar_select %p3578_p9, 1, 0 }
  0x2d   : > { %s580_s18 = sshll.u32 %s3377_s19, 4  ;;  %p2864_p10 = pneg %p3578_p9  ;;  %s581_s18 = int_to_ptr.vmem [resolvable:$true] %s580_s18 }
  0x2e   : > { %s3378_s1 = smov [#allocation6]   ;;  %s3379_s21 = smov [#allocation8]  }
  0x2f   : > { %p3586_p11 = pnand %p2864_p10, %p4295_p0  ;;  %s591_s0 = sshll.u32 %s3378_s1, 4  ;;  %s3590_s0 = int_to_ptr.vmem [resolvable:$true] %s591_s0 }
  0x30   : > { %s602_s17 = sshll.u32 %s3379_s21, 4  ;;  %s4343_s19 = sld [smem:[#allocation33_spill]]  ;;  %s3592_s17 = int_to_ptr.vmem [resolvable:$true] %s602_s17 }
  0x31   : > { %p3602_p13 = pneg %p3586_p11 }
  0x36   : > { %s3099_s14 = scalar_lea.hbm %s4343_s19, 16 }
  0x37   : > { %p3100_p12 = scmp.ne.s32.totalorder %s4343_s19, %s3099_s14  ;;  %p3106_p3 = scmp.lt.u32.totalorder %s3099_s14, %s4343_s19 }
  0x39   : > { %p3102_p1 = pnand %p3602_p13, %p3100_p12 }
  0x3b   : > { %p3103_p2 = pneg %p3102_p1 }
  0x3d   : > { %p3108_p4 = pnand %p3106_p3, %p3103_p2 }
  0x3f   : > { %3111 = shalt.err (!%p3108_p4)
}
  0x40   : > { %s3112_s15 = scalar_lea.vmem %s581_s18, 16  ;;  %s3119_s12 = scalar_lea.vmem %s581_s18, 32 }
  0x41   : > { %p3113_p5 = scmp.ne.s32.totalorder %s581_s18, %s3112_s15  ;;  %p3120_p0 = scmp.lt.s32.totalorder %s581_s18, %s581_s18 }
  0x42   : > { %p3121_p8 = scmp.lt.s32.totalorder %s3119_s12, %s3112_s15 }
  0x43   : > { %p3115_p7 = pnand %p3113_p5, %p3602_p13 }
  0x44   : > { %p3122_p6 = por %p3121_p8, %p3120_p0 }
  0x45   : > { %p3116_p10 = pneg %p3115_p7 }
  0x47   : > { %p3123_p9 = pnand %p3122_p6, %p3116_p10 }
  0x49   : > { %3126 = shalt.err (!%p3123_p9)
}
  0x4a   : > { %2867 = dma.hbm_to_vmem [thread:$0]  (!%p3586_p11), %s4343_s19, 16, %s581_s18, [#allocation4]  }
  0x4b   : > { %s4345_s21 = sld [smem:[#allocation34_spill]] }
  0x51   : > { %s3127_s10 = scalar_lea.hbm %s4345_s21, 16 }
  0x52   : > { %p3128_p12 = scmp.ne.s32.totalorder %s4345_s21, %s3127_s10  ;;  %p3134_p6 = scmp.lt.u32.totalorder %s3127_s10, %s4345_s21 }
  0x54   : > { %p3130_p1 = pnand %p3128_p12, %p3602_p13 }
  0x56   : > { %p3131_p0 = pneg %p3130_p1 }
  0x58   : > { %p3136_p8 = pnand %p3134_p6, %p3131_p0 }
  0x5a   : > { %3139 = shalt.err (!%p3136_p8)
}
  0x5b   : > { %s3140_s18 = scalar_lea.vmem %s3590_s0, 16  ;;  %s3147_s8 = scalar_lea.vmem %s3590_s0, 32 }
  0x5c   : > { %p3141_p9 = scmp.ne.s32.totalorder %s3590_s0, %s3140_s18  ;;  %p3148_p4 = scmp.lt.s32.totalorder %s3590_s0, %s3590_s0 }
  0x5d   : > { %p3149_p5 = scmp.lt.s32.totalorder %s3147_s8, %s3140_s18 }
  0x5e   : > { %p3143_p2 = pnand %p3141_p9, %p3602_p13 }
  0x5f   : > { %p3150_p7 = por %p3149_p5, %p3148_p4 }
  0x60   : > { %p3144_p3 = pneg %p3143_p2 }
  0x62   : > { %p3151_p10 = pnand %p3150_p7, %p3144_p3 }
  0x64   : > { %3154 = shalt.err (!%p3151_p10)
}
  0x65   : > { %2870 = dma.hbm_to_vmem [thread:$0]  (!%p3586_p11), %s4345_s21, 16, %s3590_s0, [#allocation7]  }
  0x66   : > { %s4346_s14 = sld [smem:[#allocation35_spill]] }
  0x6c   : > { %s3155_s1 = scalar_lea.hbm %s4346_s14, 16 }
  0x6d   : > { %p3156_p12 = scmp.ne.s32.totalorder %s4346_s14, %s3155_s1  ;;  %p3162_p6 = scmp.lt.u32.totalorder %s3155_s1, %s4346_s14 }
  0x6f   : > { %p3158_p1 = pnand %p3156_p12, %p3602_p13 }
  0x71   : > { %p3159_p0 = pneg %p3158_p1 }
  0x73   : > { %p3164_p8 = pnand %p3162_p6, %p3159_p0 }
  0x75   : > { %3167 = shalt.err (!%p3164_p8)
}
  0x76   : > { %s3168_s0 = scalar_lea.vmem %s3592_s17, 16  ;;  %s3175_s9 = scalar_lea.vmem %s3592_s17, 32 }
  0x77   : > { %p3169_p9 = scmp.ne.s32.totalorder %s3592_s17, %s3168_s0  ;;  %p3176_p4 = scmp.lt.s32.totalorder %s3592_s17, %s3592_s17 }
  0x78   : > { %p3177_p5 = scmp.lt.s32.totalorder %s3175_s9, %s3168_s0 }
  0x79   : > { %p3171_p2 = pnand %p3169_p9, %p3602_p13 }
  0x7a   : > { %p3178_p7 = por %p3177_p5, %p3176_p4 }
  0x7b   : > { %p3172_p3 = pneg %p3171_p2 }
  0x7d   : > { %p3179_p10 = pnand %p3178_p7, %p3172_p3 }
  0x7f   : > { %3182 = shalt.err (!%p3179_p10)
}
  0x80   : > { %2873 = dma.hbm_to_vmem [thread:$0]  (!%p3586_p11), %s4346_s14, 16, %s3592_s17, [#allocation7]  }
  0x81   : > { %s3380_s16 = smov [#allocation9]   ;;  %s4347_s5 = sld [smem:[#allocation36_spill]] }
  0x82   : > { %s612_s1 = sshll.u32 %s3380_s16, 4  ;;  %s613_s1 = int_to_ptr.vmem [resolvable:$true] %s612_s1 }
  0x87   : > { %s3183_s18 = scalar_lea.hbm %s4347_s5, 256 }
  0x88   : > { %p3184_p12 = scmp.ne.s32.totalorder %s4347_s5, %s3183_s18  ;;  %p3190_p6 = scmp.lt.u32.totalorder %s3183_s18, %s4347_s5 }
  0x8a   : > { %p3186_p1 = pnand %p3184_p12, %p3602_p13 }
  0x8c   : > { %p3187_p0 = pneg %p3186_p1 }
  0x8e   : > { %p3192_p8 = pnand %p3190_p6, %p3187_p0 }
  0x90   : > { %3195 = shalt.err (!%p3192_p8)
}
  0x91   : > { %s3196_s17 = scalar_lea.vmem %s613_s1, 256  ;;  %p3204_p4 = scmp.lt.s32.totalorder %s613_s1, %s613_s1 }
  0x92   : > { %p3197_p9 = scmp.ne.s32.totalorder %s613_s1, %s3196_s17  ;;  %p3205_p5 = scmp.lt.s32.totalorder %s3196_s17, %s3196_s17 }
  0x94   : > { %p3199_p2 = pnand %p3197_p9, %p3602_p13  ;;  %p3206_p7 = por %p3205_p5, %p3204_p4 }
  0x96   : > { %p3200_p3 = pneg %p3199_p2 }
  0x98   : > { %p3207_p10 = pnand %p3206_p7, %p3200_p3 }
  0x9a   : > { %3210 = shalt.err (!%p3207_p10)
}
  0x9b   : > { %s3381_s10 = smov 128   ;;  %s3382_s11 = smov 8  }
  0x9c   : > { %2876 = dma.hbm_to_vmem [thread:$0]  (!%p3586_p11), %s4347_s5, 256, %s613_s1, [#allocation10], %s3381_s10, %s3381_s10, %s3382_s11  }
  0x9d   : > { %s45_s16 = sadd.s32 1, %s3367_s27  ;;  %s48_s15 = sadd.s32 1, %s3371_s28 }
  0x9e   : > { %p46_p13 = scmp.ge.s32.totalorder %s45_s16, 2  ;;  %s212_s12 = sadd.s32 1, %s3355_s25 }
  0x9f   : > { %p219_p12 = scmp.ne.s32.totalorder %s3355_s25, %s3351_s2  ;;  %p220_p1 = scmp.eq.s32.totalorder %s3375_s4, 0 }
  0xa0   : > { %s4409_s16 = smov (%p46_p13, %s45_s16), 0  ;;  %s4411_s15 = smov (!%p46_p13, %s48_s15), %s3371_s28 }
  0xa1   : > { %4348 = sst [smem:[#allocation27_spill]] %s4409_s16  ;;  %s209_s30 = ssub.s32 %s3367_s27, %s4409_s16 }
  0xa2   : > { %p50_p11 = scmp.ge.s32.totalorder %s4411_s15, 2  ;;  %p210_p0 = scmp.eq.s32.totalorder %s209_s30, 0 }
  0xa3   : > { %p3695_p6 = por %p220_p1, %p219_p12  ;;  %p225_p8 = scmp.ne.s32.totalorder %s3351_s2, %s3347_s24 }
  0xa4   : > { %s4413_s15 = smov (%p50_p11, %s4411_s15), 0  ;;  %p4352_p9 = scmp.eq.s32.totalorder %s3559_s29, 0 }
  0xa5   : > { %4350 = sst [smem:[#allocation28_spill]] %s4413_s15  ;;  %s537_s0 = ssub.s32 %s3371_s28, %s4413_s15 }
  0xa6   : > { %s3704_s18 = scalar_select %p210_p0, %s3355_s25, %s212_s12  }
  0xa7   : > { %p3708_p2 = por %p4352_p9, %p225_p8  ;;  %p538_p3 = scmp.eq.s32.totalorder %s537_s0, 0 }
  0xa8   : > { %4351 = sst [smem:[#allocation29_spill]] %s3704_s18  ;;  %s540_s9 = sadd.s32 1, %s3343_s23 }
  0xa9   : > { %p2889_p4 = scmp.lt.s32.totalorder %s3375_s4, 4  ;;  %s646_s17 = sand.u32 1, %s3375_s4  }
  0xaa   : > { %s3718_s10 = scalar_select %p538_p3, %s3343_s23, %s540_s9  }
  0xab   : > { %s648_s11 = sand.u32 1, %s3355_s25   ;;  %s2580_s24 = sshll.u32 %s3367_s27, 4 }
  0xac   : > { %4354 = sst [smem:[#allocation30_spill]] %s3718_s10  ;;  %s4355_s7 = sld [smem:[#allocation37_spill]] }
  0xad   : > { %s649_s12 = scalar_lea.vmem [#allocation11], %s648_s11  ;;  %p3731_p5 = pnand %p2889_p4, %p3695_p6 }
  0xae   : > { %s656_s5 = sshll.u32 %s649_s12, 4  ;;  %s647_s9 = scalar_lea.sflag [#allocation4], %s646_s17  ;;  %s3727_s5 = int_to_ptr.vmem [resolvable:$true] %s656_s5 }
  0xaf   : > { %p3213_p10 = pneg %p3731_p5 }
  0xb2   : > { %s3725_s30 = scalar_lea.hbm %s4355_s7, %s2580_s24  ;;  %s3216_s19 = scalar_lea.hbm %s4355_s7, 32 }
  0xb3   : > { %s3211_s14 = scalar_lea.hbm %s3725_s30, 16  ;;  %p3217_p1 = scmp.lt.u32.totalorder %s3725_s30, %s4355_s7 }
  0xb4   : > { %p3212_p7 = scmp.ne.s32.totalorder %s3725_s30, %s3211_s14  ;;  %p3218_p11 = scmp.lt.u32.totalorder %s3216_s19, %s3211_s14 }
  0xb5   : > { %p3220_p6 = scmp.lt.u32.totalorder %s3211_s14, %s3725_s30 }
  0xb6   : > { %p3214_p13 = pnand %p3213_p10, %p3212_p7  ;;  %p3219_p0 = por %p3218_p11, %p3217_p1 }
  0xb8   : > { %p3215_p12 = pneg %p3214_p13  ;;  %p3221_p8 = por %p3220_p6, %p3219_p0 }
  0xba   : > { %p3222_p9 = pnand %p3221_p8, %p3215_p12 }
  0xbc   : > { %3225 = shalt.err (!%p3222_p9)
}
  0xbd   : > { %s3226_s17 = scalar_lea.vmem %s3727_s5, 16  ;;  %s3383_s12 = smov [#allocation11]  }
  0xbe   : > { %p3227_p3 = scmp.ne.s32.totalorder %s3727_s5, %s3226_s17  ;;  %s3231_s11 = sshll.u32 %s3383_s12, 4  ;;  %s3232_s11 = int_to_ptr.vmem [resolvable:$false] %s3231_s11 }
  0xbf   : > { %s3233_s24 = scalar_lea.vmem %s3232_s11, 32  ;;  %p3234_p13 = scmp.lt.s32.totalorder %s3727_s5, %s3232_s11 }
  0xc0   : > { %p3229_p4 = pnand %p3227_p3, %p3213_p10  ;;  %p3235_p1 = scmp.lt.s32.totalorder %s3233_s24, %s3226_s17 }
  0xc2   : > { %p3230_p7 = pneg %p3229_p4  ;;  %p3236_p11 = por %p3235_p1, %p3234_p13 }
  0xc4   : > { %p3237_p0 = pnand %p3236_p11, %p3230_p7 }
  0xc6   : > { %3240 = shalt.err (!%p3237_p0)
}
  0xc7   : > { %2880 = dma.hbm_to_vmem [thread:$0]  (!%p3731_p5), %s3725_s30, 16, %s3727_s5, %s647_s9  }
  0xc8   : > { %p4357_p12 = scmp.ne.s32.totalorder %s4341_s20, 0 }
  0xc9   : > { %p4358_p10 = scmp.eq.s32.totalorder (!%p4357_p12), %s3559_s29, 0 }
  0xca   : > { %733 = sbr.rel (%p4357_p12) target bundleno = 3135 (0xc3f), region = 100 }
  0xd1   : > { %3314 = dma.done.wait (%p4358_p10), [#allocation4], 16   ;;  %p4359_p6 = pmov %p4358_p10 }
  0xd3   : > { %3316 = vsyncadd (%p4359_p6), [#allocation4], 4294967280  ;;  %p4360_p8 = pmov %p4359_p6 }
  0xd4   : > { %p4361_p9 = pmov %p4359_p6 }
  0xd5   : > { %3318 = dma.done.wait (%p4360_p8), [#allocation7], 32  }
  0xd6   : > { %3320 = vsyncadd (%p4361_p9), [#allocation7], 4294967264  ;;  %p4362_p3 = pmov %p4359_p6 }
  0xd8   : > { %3322 = dma.done.wait (%p4362_p3), [#allocation10], 256   ;;  %p4363_p5 = pmov %p4362_p3 }
  0xd9   : > { %s751_s5 = sand.u32 1, %s3559_s29   ;;  %s753_s20 = sand.u32 1, %s3351_s2  }
  0xda   : > { %3324 = vsyncadd (%p4363_p5), [#allocation10], 4294967040  ;;  %s752_s14 = scalar_lea.sflag [#allocation4], %s751_s5  ;;  %s3776_s30 = scalar_lea.vmem [#allocation11], %s753_s20 }
  0xdb   : > { %3326 = dma.done.wait (%p3708_p2), %s752_s14, 16  }
  0xdc   : > { %3328 = vsyncadd (%p3708_p2), %s752_s14, 4294967280  ;;  %p855_p4 = scmp.lt.s32.totalorder %s3363_s26, 1  ;;  %p860_p7 = scmp.lt.s32.totalorder %s3359_s3, 1 }
  0xdd   : > { %s4364_s13 = sld [smem:[#allocation31_spill]]  ;;  %s4366_s16 = sld [smem:[#allocation38_spill]] }
  0xde   : > { %s856_s9 = scalar_select %p855_p4, %s3363_s26, 1 }
  0xdf   : > { %s3787_s19 = scalar_select %p860_p7, %s3359_s3, 1 }
  0xe0   : > { %s2652_s29 = sshll.u32 %s856_s9, 3  ;;  %s4367_s18 = sld [smem:[#allocation40_spill]] }
  0xe1   : > { %s2653_s5 = sshll.u32 %s3787_s19, 4  ;;  %s4369_s24 = sld [smem:[#allocation42_spill]] }
  0xe2   : > { %s4370_s14 = sld [smem:[#allocation43_spill]]  ;;  %s4371_s15 = sld [smem:[#allocation44_spill]] }
  0xe3   : > { %s859_s17 = scalar_lea.vmem %s4364_s13, %s2652_s29  ;;  %s3804_s28 = scalar_lea.vmem %s4366_s16, %s2653_s5 }
  0xe4   : > { %s4372_s9 = sld [smem:[#allocation45_spill]]  ;;  %s2656_s4 = sshll.u32 %s3787_s19, 5 }
  0xe5   : > { %s4373_s1 = sld [smem:[#allocation46_spill]]  ;;  %s4374_s11 = sld [smem:[#allocation47_spill]] }
  0xe6   : > { %s3809_s25 = scalar_lea.vmem %s4367_s18, %s2653_s5  ;;  %s4375_s0 = sand.u32 1, %s3339_s22  }
  0xe7   : > { %s881_s2 = scalar_lea.vmem %s4369_s24, %s3787_s19  ;;  %p2596_p2 = scmp.ne.s32.totalorder %s3359_s3, 0 }
  0xe8   : > { %s884_s7 = scalar_lea.vmem %s4370_s14, %s3787_s19  ;;  %s3826_s10 = scalar_lea.vmem %s4371_s15, %s2653_s5  ;;  %v3384_v1 = vmov (!%p2596_p2), 0.0   ;;  %vm3385_vm0 = vmmov (!%p2596_p2), 0   ;;  %v3005_v4 = vld [vmem:[%s859_s17] sm:$0xff] (!%p2596_p2)   ;;  %vm944_vm1 = vcmask (!%p2596_p2), 392192   ;;  %v2597_v5 = vld [vmem:[#allocation3] ss:$0 sm:$0xff] (!%p2596_p2) }
  0xe9   : > { %s3844_s14 = scalar_lea.vmem [#allocation12], %s4375_s0  ;;  %905 = sbr.rel (%p2596_p2) target bundleno = 474 (0x1da), region = 124  ;;  %2714 = vmatprep.subr.bf16.mxu0 (!%p2596_p2), %v3384_v1  ;;  %2720 = vmatprep.mubr.msk.bf16.mxu0 (!%p2596_p2), %vm3385_vm0, %v3384_v1  ;;  %v992_v7 = vld [vmem:[#allocation9] sm:$0xff] (!%p2596_p2)  ;;  %v989_v8 = vld [vmem:[#allocation6] sm:$0x1] (!%p2596_p2)  ;;  %v993_v13 = vld [vmem:[#allocation9 + $0x8] sm:$0xff] (!%p2596_p2) }
  0xea   : > { %s892_s23 = scalar_lea.vmem %s4372_s9, %s3787_s19  ;;  %s4376_s16 = sld [smem:[#allocation32_spill]] (!%p2596_p2)  ;;  %v990_v9 = vld [vmem:[#allocation8] sm:$0x1] (!%p2596_p2)  ;;  %vm998_vm2 = vcmask (!%p2596_p2), 1040384   ;;  %vm1007_vm3 = vcmask (!%p2596_p2), 261120  }
  0xeb   : > { %s3836_s13 = scalar_lea.vmem %s4373_s1, %s2656_s4  ;;  %s900_s20 = scalar_lea.vmem %s4374_s11, %s3787_s19  ;;  %v991_v16 = vadd.f32 (!%p2596_p2), %v990_v9, %v989_v8 }
  0xf0   : > { %v3002_v0 = vld [vmem:[%s4376_s16] sm:$0xff]   ;;  %v3003_v2 = vld [vmem:[%s4376_s16 + $0x8] sm:$0xff]   ;;  %v3004_v3 = vld [vmem:[%s4376_s16 + $0x10] sm:$0xff]  }
  0xf1   : > { %2715 = vmatpush3.bf16.msra.mxu0 %v3002_v0 }
  0xf2   : > { %2716 = vmatprep.subr.bf16.mxu0 %v3384_v1 }
  0xf5   : > { %2717 = vmatpush3.bf16.msra.mxu0 %v3003_v2 }
  0xf6   : > { %2718 = vmatprep.subr.bf16.mxu0 %v3384_v1 }
  0xf9   : > { %2719 = vmatpush3.bf16.msra.mxu0 %v3004_v3 }
  0xfc   : > { %2721 = vmatmul.mubr.msk.bf16.vlgmr.msra.gmra.mrb[0].mxu0 %vm944_vm1, %v3005_v4 }
 0x1cf   : > { %v982_v6 = vpop.f32.mrb[0].mxu0 }
 0x1d0   : > { %v983_v10 = vadd.f32 %v2597_v5, %v982_v6  ;;  %v2722_v11 = vpop.f32.mrb[1].mxu0 }
 0x1d1   : > { %v985_v12 = vpop.f32.mrb[2].mxu0 }
 0x1d2   : > { %v994_v14 = vadd.f32 %v992_v7, %v983_v10  ;;  %v986_v15 = vadd.f32 %v2597_v5, %v985_v12  ;;  %v2723_v17 = vpop.f32.mrb[3].mxu0 }
 0x1d4   : > { %v999_v18 = vrot.slane %v994_v14, 7  ;;  %v995_v19 = vadd.f32 %v993_v13, %v986_v15 }
 0x1d6   : > { %v1000_v20 = vrot.slane %v995_v19, 7  ;;  %v1005_v21 = vsel %vm998_vm2, %v991_v16, %v999_v18 }
 0x1d7   : > { %1008 = vst.msk [vmem:[#allocation2] sm:$0xff] %vm1007_vm3, %v1005_v21 }
 0x1d8   : > { %v1001_v22 = vsel %vm998_vm2, %v999_v18, %v1000_v20  ;;  %v1006_v23 = vsel %vm998_vm2, %v1000_v20, 0.0 }
 0x1d9   : > { %1009 = vst.msk [vmem:[#allocation2 + $0x8] sm:$0xff] %vm1007_vm3, %v1001_v22  ;;  %1010 = vst.msk [vmem:[#allocation2 + $0x10] sm:$0xff] %vm1007_vm3, %v1006_v23 }
 0x1da PF: > { %vm1020_vm4 = vcmask 261120   ;;  %v3021_v36 = vld [vmem:[%s3804_s28] sm:$0xff]   ;;  %v3022_v37 = vld [vmem:[%s3804_s28 + $0x8] sm:$0xff]   ;;  %s4377_s9 = scalar_lea.vmem %s4270_s6, %s3787_s19  ;;  %s4378_s1 = sld [smem:[#allocation39_spill]]  ;;  %vm1187_vm5 = vcmask 64512   ;;  %vm1464_vm7 = vcmask 195584  }
 0x1db   : > { %2724 = vmatprep.subr.bf16.mxu0 %v3021_v36  ;;  %v2603_v2 = vld [vmem:[%s4377_s9] ss:$0 sm:$0xff]  ;;  %s3387_s12 = smov 112   ;;  %s3388_s11 = smov 104   ;;  %vm1616_vm8 = vcmask 1043456   ;;  %vm1893_vm9 = vcmask 130048  }
 0x1dc   : > { %2725 = vmatpush3.bf16.msra.mxu0 %v3021_v36  ;;  %v2604_v9 = vld [vmem:[%s3776_s30] ss:$0 sm:$0xff]  ;;  %s3386_s30 = smov 120   ;;  %s3389_s0 = smov 96   ;;  %vm2197_vm10 = vcmask 523264  }
 0x1dd   : > { %2726 = vmatprep.subr.bf16.mxu0 %v3022_v37  ;;  %s3391_s5 = smov 64   ;;  %s3392_s21 = smov 8  }
 0x1de   : > { %v3858_v25 = vld [vmem:[#allocation2] sm:$0xff]  ;;  %s3393_s15 = smov 16   ;;  %s3394_s4 = smov 24  }
 0x1df   : > { %v1021_v28 = vsel %vm1020_vm4, %v3858_v25, 0.0  ;;  %v1034_v29 = vmul.f32 %v3858_v25, %v3858_v25  ;;  %s4380_s18 = sld [smem:[#allocation41_spill]]  ;;  %p2645_p13 = scmp.ne.s32.totalorder %s3359_s3, 1 }
 0x1e0   : > { %v3856_v24 = vld [vmem:[#allocation2 + $0x10] sm:$0xff]  ;;  %v3860_v26 = vld [vmem:[#allocation2 + $0x8] sm:$0xff]  ;;  %1022 = vadd.xlane.f32.xlu0 %v1021_v28  ;;  %2727 = vmatpush3.bf16.msra.mxu0 %v3022_v37  ;;  %s4379_s24 = scalar_lea.vmem %s4378_s1, %s3787_s19  ;;  %vm3396_vm11 = vmmov (!%p2645_p13), 0  }
 0x1e1   : > { %v1027_v27 = vsel %vm1020_vm4, %v3856_v24, 0.0  ;;  %v1036_v30 = vmul.f32 %v3856_v24, %v3856_v24  ;;  %v1035_v31 = vmul.f32 %v3860_v26, %v3860_v26  ;;  %v1037_v32 = vsel %vm1020_vm4, %v1034_v29, 0.0  ;;  %v2605_v17 = vld [vmem:[%s4379_s24] ss:$0 sm:$0xff] }
 0x1e2   : > { %1028 = vadd.xlane.f32.xlu1 %v1027_v27  ;;  %v1024_v33 = vsel %vm1020_vm4, %v3860_v26, 0.0 }
 0x1e3   : > { %v1043_v34 = vsel %vm1020_vm4, %v1036_v30, 0.0  ;;  %v1040_v35 = vsel %vm1020_vm4, %v1035_v31, 0.0 }
 0x1e4   : > { %1025 = vadd.xlane.f32.xlu0 %v1024_v33 }
 0x1e5   : > { %s4381_s28 = scalar_lea.vmem %s4380_s18, %s3787_s19 }
 0x1e6   : > { %1038 = vadd.xlane.f32.xlu1 %v1037_v32 }
 0x1e8   : > { %1041 = vadd.xlane.f32.xlu0 %v1040_v35 }
 0x1ea   : > { %1044 = vadd.xlane.f32.xlu1 %v1043_v34 }
 0x26d   : > { %v1023_v39 = vpop.xlane.xlu0 %1022 }
 0x26e   : > { %v1031_v40 = vmul.f32 0.03125, %v1023_v39 }
 0x26f   : > { %v1029_v38 = vpop.xlane.xlu1 %1028 }
 0x270   : > { %v1033_v41 = vmul.f32 0.03125, %v1029_v38  ;;  %v1049_v44 = vmul.f32 %v1031_v40, %v1031_v40  ;;  %v1058_v63 = vsub.f32 %v3858_v25, %v1031_v40 }
 0x271   : > { %v1026_v43 = vpop.xlane.xlu0 %1025 }
 0x272   : > { %v1032_v46 = vmul.f32 0.03125, %v1026_v43  ;;  %v1051_v48 = vmul.f32 %v1033_v41, %v1033_v41  ;;  %v1060_v1 = vsub.f32 %v3856_v24, %v1033_v41 }
 0x273   : > { %v1039_v42 = vpop.xlane.xlu1 %1038 }
 0x274   : > { %v1046_v45 = vmul.f32 0.03125, %v1039_v42  ;;  %v1050_v52 = vmul.f32 %v1032_v46, %v1032_v46  ;;  %v1059_v4 = vsub.f32 %v3860_v26, %v1032_v46 }
 0x275   : > { %v1042_v50 = vpop.xlane.xlu0 %1041 }
 0x276   : > { %v1052_v47 = vsub.f32 %v1046_v45, %v1049_v44  ;;  %v1047_v54 = vmul.f32 0.03125, %v1042_v50 }
 0x277   : > { %v1045_v49 = vpop.xlane.xlu1 %1044 }
 0x278   : > { %v1055_v51 = vmax.f32 %v1052_v47, 0.0  ;;  %v1048_v53 = vmul.f32 0.03125, %v1045_v49  ;;  %v1053_v57 = vsub.f32 %v1047_v54, %v1050_v52  ;;  %v1014_v52 = vlaneseq }
 0x27a   : > { %v1061_v55 = vadd.f32 1e-05, %v1055_v51  ;;  %v1054_v56 = vsub.f32 %v1048_v53, %v1051_v48  ;;  %v1056_v59 = vmax.f32 %v1053_v57, 0.0  ;;  %v1015_v53 = vand.u32 127, %v1014_v52 }
 0x27c   : > { %3031 = vrsqrt.f32 %v1061_v55  ;;  %v1057_v58 = vmax.f32 %v1054_v56, 0.0  ;;  %v1062_v61 = vadd.f32 1e-05, %v1056_v59  ;;  %vm1016_vm6 = vcmp.lt.s32.totalorder %v1015_v53, 17 }
 0x27d   : > { %v3390_v55 = vmov -1e+30  }
 0x27e   : > { %v1063_v60 = vadd.f32 1e-05, %v1057_v58  ;;  %v1017_v56 = vsel %vm1016_vm6, 0.0, %v3390_v55 }
 0x280   : > { %3033 = vrsqrt.f32 %v1063_v60 }
 0x281   : > { %3035 = vrsqrt.f32 %v1062_v61 }
 0x286   : > { %v3032_v62 = vpop.eup %3031 }
 0x287   : > { %v1067_v0 = vmul.f32 %v3032_v62, %v1058_v63 }
 0x289   : > { %v1076_v8 = vmul.f32 %v2603_v2, %v1067_v0 }
 0x28a   : > { %v3034_v3 = vpop.eup %3033 }
 0x28b   : > { %v3036_v5 = vpop.eup %3035  ;;  %v1069_v6 = vmul.f32 %v3034_v3, %v1060_v1  ;;  %v1085_v13 = vadd.f32 %v2604_v9, %v1076_v8 }
 0x28c   : > { %v1068_v7 = vmul.f32 %v3036_v5, %v1059_v4 }
 0x28d   : > { %v1078_v10 = vmul.f32 %v2603_v2, %v1069_v6 }
 0x28e   : > { %v1077_v11 = vmul.f32 %v2603_v2, %v1068_v7 }
 0x28f   : > { %v1087_v12 = vadd.f32 %v2604_v9, %v1078_v10 }
 0x290   : > { %v1086_v14 = vadd.f32 %v2604_v9, %v1077_v11 }
 0x291   : > { %v1089_v15 = vpack.c.bf16 %v1087_v12, %v1087_v12 }
 0x292   : > { %v1088_v16 = vpack.c.bf16 %v1086_v14, %v1085_v13 }
 0x294   : > { %2728 = vmatprep.mubr.msk.bf16.mxu0 %vm1020_vm4, %v1088_v16 }
 0x295   : > { %2729 = vmatmul.mubr.msk.bf16.vlgmr.msra.gmra.mrb[0].mxu0 %vm1020_vm4, %v1089_v15 }
 0x368   : > { %v2730_v18 = vpop.f32.mrb[0].mxu0 }
 0x369   : > { %v1162_v19 = vadd.f32 %v2730_v18, %v2605_v17  ;;  %v1153_v20 = vpop.f32.mrb[1].mxu0 }
 0x36a   : > { %v2731_v21 = vpop.f32.mrb[2].mxu0  ;;  %v1154_v27 = vadd.f32 %v2605_v17, %v1153_v20 }
 0x36b   : > { %v3895_v22 = vpack.c.bf16 %v1162_v19, %v1162_v19  ;;  %v1156_v23 = vpop.f32.mrb[3].mxu0 }
 0x36c   : > { %v1157_v28 = vadd.f32 %v2605_v17, %v1156_v23 }
 0x36d   : > { %1173 = vrot.lane.b32.xlu1 %v3895_v22, %s3386_s30 }
 0x36e   : > { %v3898_v29 = vpack.c.bf16 %v1157_v28, %v1154_v27 }
 0x370   : > { %1171 = vrot.lane.b32.xlu0 %v3898_v29, %s3386_s30  ;;  %2736 = vmatprep.mubr.msk.bf16.mxu1 %vm1187_vm5, %v3898_v29 }
 0x371   : > { %1175 = vrot.lane.b32.xlu1 %v3898_v29, %s3387_s12 }
 0x374   : > { %1177 = vrot.lane.b32.xlu0 %v3895_v22, %s3387_s12  ;;  %s4386_s12 = sld [smem:[#allocation48_spill]] (!%p2645_p13) }
 0x375   : > { %1179 = vrot.lane.b32.xlu1 %v3898_v29, %s3388_s11 }
 0x378   : > { %1183 = vrot.lane.b32.xlu0 %v3898_v29, %s3389_s0 }
 0x379   : > { %1181 = vrot.lane.b32.xlu1 %v3895_v22, %s3388_s11 }
 0x37c   : > { %1185 = vrot.lane.b32.xlu0 %v3895_v22, %s3389_s0 }
 0x3df   : > { %v3909_v30 = vpop.permute.xlu1 %1173 }
 0x3e2   : > { %v3911_v31 = vpop.permute.xlu0 %1171 }
 0x3e3   : > { %v3913_v32 = vpop.permute.xlu1 %1175  ;;  %2744 = vmatprep.mubr.msk.bf16.mxu0 %vm1187_vm5, %v3911_v31  ;;  %1248 = vrot.lane.b32.xlu1 %v3911_v31, %s3389_s0 }
 0x3e4   : > { %1312 = vrot.lane.b32.xlu0 %v3913_v32, %s3389_s0 }
 0x3e6   : > { %v3919_v33 = vpop.permute.xlu0 %1177 }
 0x3e7   : > { %1250 = vrot.lane.b32.xlu1 %v3909_v30, %s3389_s0  ;;  %v3922_v34 = vpop.permute.xlu1 %1179 }
 0x3e8   : > { %1314 = vrot.lane.b32.xlu0 %v3919_v33, %s3389_s0 }
 0x3ea   : > { %v1184_v35 = vpop.permute.xlu0 %1183 }
 0x3eb   : > { %1376 = vrot.lane.b32.xlu1 %v3922_v34, %s3389_s0  ;;  %2832 = vmatprep.subr.msk.bf16.mxu1 %vm1187_vm5, %v1184_v35  ;;  %v1195_v36 = vsel %vm1187_vm5, %v1184_v35, 0  ;;  %v3928_v37 = vpop.permute.xlu1 %1181 }
 0x3ec   : > { %2733 = vmatpush3.bf16.xpose.msra.mxu1 %v1195_v36 }
 0x3ee   : > { %v1186_v38 = vpop.permute.xlu0 %1185 }
 0x3ef   : > { %1378 = vrot.lane.b32.xlu1 %v3928_v37, %s3389_s0  ;;  %2833 = vmatprep.subr.msk.bf16.mxu1 %vm1187_vm5, %v1186_v38  ;;  %v1198_v39 = vsel %vm1187_vm5, %v1186_v38, 0 }
 0x3f4   : > { %2735 = vmatpush3.bf16.xpose.msra.mxu1 %v1198_v39 }
 0x3fb   : > { %2737 = vmatmul.mubr.msk.bf16.vlgmr.msra.gmra.mrb[0].mxu1 %vm1187_vm5, %v3895_v22 }
 0x3fc   : > { %2752 = vmatprep.mubr.msk.bf16.mxu1 %vm1187_vm5, %v3913_v32 }
 0x455   : > { %v1249_v40 = vpop.permute.xlu1 %1248 }
 0x456   : > { %v1259_v41 = vsel %vm1187_vm5, %v1249_v40, 0  ;;  %2834 = vmatprep.subr.msk.bf16.mxu0 %vm1187_vm5, %v1249_v40  ;;  %v1313_v42 = vpop.permute.xlu0 %1312 }
 0x457   : > { %v1323_v43 = vsel %vm1187_vm5, %v1313_v42, 0  ;;  %2741 = vmatpush3.bf16.xpose.msra.mxu0 %v1259_v41  ;;  %2836 = vmatprep.subr.msk.bf16.mxu1 %vm1187_vm5, %v1313_v42 }
 0x458   : > { %2749 = vmatpush3.bf16.xpose.msra.mxu1 %v1323_v43 }
 0x459   : > { %v1251_v44 = vpop.permute.xlu1 %1250 }
 0x45a   : > { %2835 = vmatprep.subr.msk.bf16.mxu0 %vm1187_vm5, %v1251_v44  ;;  %v1315_v45 = vpop.permute.xlu0 %1314  ;;  %v1262_v46 = vsel %vm1187_vm5, %v1251_v44, 0 }
 0x45b   : > { %2837 = vmatprep.subr.msk.bf16.mxu1 %vm1187_vm5, %v1315_v45  ;;  %v1326_v47 = vsel %vm1187_vm5, %v1315_v45, 0 }
 0x45d   : > { %v1377_v48 = vpop.permute.xlu1 %1376 }
 0x45e   : > { %v1387_v49 = vsel %vm1187_vm5, %v1377_v48, 0 }
 0x45f   : > { %2743 = vmatpush3.bf16.xpose.msra.mxu0 %v1262_v46 }
 0x460   : > { %2751 = vmatpush3.bf16.xpose.msra.mxu1 %v1326_v47  ;;  %2838 = vmatprep.subr.msk.bf16.mxu0 %vm1187_vm5, %v1377_v48 }
 0x461   : > { %v1379_v50 = vpop.permute.xlu1 %1378 }
 0x462   : > { %v1390_v51 = vsel %vm1187_vm5, %v1379_v50, 0 }
 0x466   : > { %2745 = vmatmul.mubr.msk.bf16.vlgmr.msra.gmra.mrb[4].mxu0 %vm1187_vm5, %v3909_v30 }
 0x467   : > { %2753 = vmatmul.mubr.msk.bf16.vlgmr.msra.gmra.mrb[4].mxu1 %vm1187_vm5, %v3919_v33  ;;  %2757 = vmatpush3.bf16.xpose.msra.mxu0 %v1387_v49 }
 0x468   : > { %2760 = vmatprep.mubr.msk.bf16.mxu0 %vm1187_vm5, %v3922_v34  ;;  %2839 = vmatprep.subr.msk.bf16.mxu0 %vm1187_vm5, %v1379_v50 }
 0x46f   : > { %2759 = vmatpush3.bf16.xpose.msra.mxu0 %v1390_v51 }
 0x476   : > { %2761 = vmatmul.mubr.msk.bf16.vlgmr.msra.gmra.mrb[8].mxu0 %vm1187_vm5, %v3928_v37 }
 0x4ce   : > { %v2738_v54 = vpop.f32.mrb[0].mxu1 }
 0x4cf   : > { %v1442_v57 = vmul.f32 0.35355338, %v2738_v54  ;;  %v1234_v58 = vpop.f32.mrb[1].mxu1 }
 0x4d0   : > { %v1440_v59 = vmul.f32 0.35355338, %v1234_v58  ;;  %v2739_v60 = vpop.f32.mrb[2].mxu1 }
 0x4d1   : > { %v1237_v61 = vpop.f32.mrb[3].mxu1  ;;  %v3957_v62 = vadd.f32 %v1442_v57, %v1017_v56 }
 0x4d2   : > { %v1441_v63 = vmul.f32 0.35355338, %v1237_v61  ;;  %v3961_v1 = vadd.f32 %v1440_v59, %v1017_v56 }
 0x4d3   : > { %v1471_v0 = vsel %vm1464_vm7, %v3957_v62, -inf }
 0x4d4   : > { %1472 = vmax.xlane.f32.xlu0 %v1471_v0  ;;  %v3963_v2 = vadd.f32 %v1441_v63, %v1017_v56  ;;  %v1465_v4 = vsel %vm1464_vm7, %v3961_v1, -inf }
 0x4d6   : > { %v1468_v3 = vsel %vm1464_vm7, %v3963_v2, -inf }
 0x4d7   : > { %1469 = vmax.xlane.f32.xlu1 %v1468_v3 }
 0x4d8   : > { %1466 = vmax.xlane.f32.xlu0 %v1465_v4 }
 0x539   : > { %v2746_v5 = vpop.f32.mrb[4].mxu0 }
 0x53a   : > { %v1445_v6 = vmul.f32 0.35355338, %v2746_v5  ;;  %v1298_v7 = vpop.f32.mrb[5].mxu0  ;;  %v2754_v8 = vpop.f32.mrb[4].mxu1 }
 0x53b   : > { %v1443_v9 = vmul.f32 0.35355338, %v1298_v7  ;;  %v2747_v10 = vpop.f32.mrb[6].mxu0  ;;  %v1362_v11 = vpop.f32.mrb[5].mxu1  ;;  %v1448_v35 = vmul.f32 0.35355338, %v2754_v8 }
 0x53c   : > { %v1446_v12 = vmul.f32 0.35355338, %v1362_v11  ;;  %v1301_v13 = vpop.f32.mrb[7].mxu0  ;;  %v2755_v14 = vpop.f32.mrb[6].mxu1  ;;  %v3969_v15 = vadd.f32 %v1445_v6, %v1017_v56 }
 0x53d   : > { %v1365_v16 = vpop.f32.mrb[7].mxu1  ;;  %v3971_v17 = vadd.f32 %v1443_v9, %v1017_v56  ;;  %v1444_v20 = vmul.f32 0.35355338, %v1301_v13  ;;  %v3989_v40 = vadd.f32 %v1448_v35, %v1017_v56 }
 0x53e   : > { %v1447_v18 = vmul.f32 0.35355338, %v1365_v16  ;;  %v1480_v19 = vsel %vm1464_vm7, %v3969_v15, -inf  ;;  %v3977_v23 = vadd.f32 %v1446_v12, %v1017_v56 }
 0x53f   : > { %1481 = vmax.xlane.f32.xlu1 %v1480_v19  ;;  %v1474_v21 = vsel %vm1464_vm7, %v3971_v17, -inf  ;;  %v3985_v38 = vadd.f32 %v1444_v20, %v1017_v56  ;;  %v1489_v46 = vsel %vm1464_vm7, %v3989_v40, -inf }
 0x540   : > { %1475 = vmax.xlane.f32.xlu0 %v1474_v21  ;;  %v3979_v27 = vadd.f32 %v1447_v18, %v1017_v56  ;;  %v1483_v36 = vsel %vm1464_vm7, %v3977_v23, -inf }
 0x541   : > { %v1477_v39 = vsel %vm1464_vm7, %v3985_v38, -inf }
 0x542   : > { %v1486_v28 = vsel %vm1464_vm7, %v3979_v27, -inf }
 0x543   : > { %1487 = vmax.xlane.f32.xlu1 %v1486_v28 }
 0x544   : > { %1484 = vmax.xlane.f32.xlu0 %v1483_v36 }
 0x548   : > { %1478 = vmax.xlane.f32.xlu0 %v1477_v39 }
 0x549   : > { %v2762_v41 = vpop.f32.mrb[8].mxu0 }
 0x54a   : > { %v1426_v42 = vpop.f32.mrb[9].mxu0  ;;  %v1451_v43 = vmul.f32 0.35355338, %v2762_v41 }
 0x54b   : > { %v1449_v44 = vmul.f32 0.35355338, %v1426_v42  ;;  %v2763_v45 = vpop.f32.mrb[10].mxu0 }
 0x54c   : > { %v1429_v47 = vpop.f32.mrb[11].mxu0  ;;  %1490 = vmax.xlane.f32.xlu0 %v1489_v46  ;;  %v3999_v52 = vadd.f32 %v1451_v43, %v1017_v56 }
 0x54d   : > { %v1450_v48 = vmul.f32 0.35355338, %v1429_v47  ;;  %v3993_v49 = vadd.f32 %v1449_v44, %v1017_v56 }
 0x54e   : > { %v1498_v54 = vsel %vm1464_vm7, %v3999_v52, -inf }
 0x54f   : > { %v1492_v50 = vsel %vm1464_vm7, %v3993_v49, -inf  ;;  %v3997_v51 = vadd.f32 %v1450_v48, %v1017_v56 }
 0x550   : > { %1493 = vmax.xlane.f32.xlu1 %v1492_v50 }
 0x551   : > { %v1495_v53 = vsel %vm1464_vm7, %v3997_v51, -inf }
 0x552   : > { %1496 = vmax.xlane.f32.xlu0 %v1495_v53 }
 0x554   : > { %1499 = vmax.xlane.f32.xlu1 %v1498_v54 }
 0x561   : > { %v1473_v55 = vpop.xlane.xlu0 %1472 }
 0x562   : > { %v1503_v56 = vsub.f32 %v3957_v62, %v1473_v55 }
 0x565   : > { %1668 = vrot.lane.b32.xlu1 %v3911_v31, %s3391_s5  ;;  %v1467_v57 = vpop.xlane.xlu0 %1466  ;;  %v1517_v31 = vmul.f32 1.442695, %v1503_v56 }
 0x566   : > { %v1501_v58 = vsub.f32 %v3961_v1, %v1467_v57 }
 0x567   : > { %3037 = vpow2.f32 %v1517_v31 }
 0x568   : > { %1605 = vrot.lane.b32.xlu0 %v3898_v29, %s3391_s5  ;;  %v1470_v29 = vpop.xlane.xlu1 %1469  ;;  %v1513_v59 = vmul.f32 1.442695, %v1501_v58 }
 0x569   : > { %1607 = vrot.lane.b32.xlu1 %v3895_v22, %s3391_s5  ;;  %v1502_v22 = vsub.f32 %v3963_v2, %v1470_v29 }
 0x56a   : > { %3039 = vpow2.f32 %v1513_v59 }
 0x56c   : > { %1730 = vrot.lane.b32.xlu0 %v3913_v32, %s3391_s5  ;;  %v1515_v32 = vmul.f32 1.442695, %v1502_v22 }
 0x56d   : > { %1670 = vrot.lane.b32.xlu1 %v3909_v30, %s3391_s5 }
 0x56e   : > { %3041 = vpow2.f32 %v1515_v32 }
 0x571   : > { %1792 = vrot.lane.b32.xlu1 %v3922_v34, %s3391_s5  ;;  %v4020_v60 = vpop.eup %3037 }
 0x572   : > { %v1543_v30 = vsel %vm1464_vm7, %v4020_v60, 0.0 }
 0x574   : > { %v4024_v34 = vpop.eup %3039 }
 0x575   : > { %v1537_v61 = vsel %vm1464_vm7, %v4024_v34, 0.0 }
 0x578   : > { %v4028_v62 = vpop.eup %3041 }
 0x579   : > { %v1540_v63 = vsel %vm1464_vm7, %v4028_v62, 0.0 }
 0x58b   : > { %1544 = vadd.xlane.f32.xlu0 %v1543_v30 }
 0x58f   : > { %1538 = vadd.xlane.f32.xlu0 %v1537_v61 }
 0x595   : > { %1541 = vadd.xlane.f32.xlu1 %v1540_v63 }
 0x5cc   : > { %v1482_v0 = vpop.xlane.xlu1 %1481 }
 0x5cd   : > { %v1506_v1 = vsub.f32 %v3969_v15, %v1482_v0  ;;  %v1476_v2 = vpop.xlane.xlu0 %1475 }
 0x5ce   : > { %v1504_v3 = vsub.f32 %v3971_v17, %v1476_v2 }
 0x5cf   : > { %v1523_v4 = vmul.f32 1.442695, %v1506_v1 }
 0x5d0   : > { %v1519_v5 = vmul.f32 1.442695, %v1504_v3  ;;  %v1488_v6 = vpop.xlane.xlu1 %1487 }
 0x5d1   : > { %3043 = vpow2.f32 %v1523_v4  ;;  %v1508_v7 = vsub.f32 %v3979_v27, %v1488_v6  ;;  %v1485_v8 = vpop.xlane.xlu0 %1484 }
 0x5d2   : > { %3045 = vpow2.f32 %v1519_v5  ;;  %v1507_v11 = vsub.f32 %v3977_v23, %v1485_v8 }
 0x5d3   : > { %v1527_v9 = vmul.f32 1.442695, %v1508_v7 }
 0x5d4   : > { %v1525_v15 = vmul.f32 1.442695, %v1507_v11 }
 0x5d5   : > { %v1479_v10 = vpop.xlane.xlu0 %1478  ;;  %3047 = vpow2.f32 %v1527_v9 }
 0x5d6   : > { %v1505_v16 = vsub.f32 %v3985_v38, %v1479_v10 }
 0x5d8   : > { %v1521_v27 = vmul.f32 1.442695, %v1505_v16 }
 0x5d9   : > { %v1491_v12 = vpop.xlane.xlu0 %1490 }
 0x5da   : > { %v1509_v13 = vsub.f32 %v3989_v40, %v1491_v12 }
 0x5db   : > { %v4037_v14 = vpop.eup %3043 }
 0x5dc   : > { %v1529_v17 = vmul.f32 1.442695, %v1509_v13  ;;  %v1552_v18 = vsel %vm1464_vm7, %v4037_v14, 0.0  ;;  %v4042_v19 = vpop.eup %3045 }
 0x5dd   : > { %1553 = vadd.xlane.f32.xlu1 %v1552_v18  ;;  %v1494_v20 = vpop.xlane.xlu1 %1493  ;;  %v1546_v35 = vsel %vm1464_vm7, %v4042_v19, 0.0 }
 0x5de   : > { %3049 = vpow2.f32 %v1529_v17  ;;  %v1510_v21 = vsub.f32 %v3993_v49, %v1494_v20 }
 0x5df   : > { %v1497_v23 = vpop.xlane.xlu0 %1496  ;;  %3051 = vpow2.f32 %v1525_v15  ;;  %v4048_v36 = vpop.eup %3047 }
 0x5e0   : > { %v1511_v28 = vsub.f32 %v3997_v51, %v1497_v23  ;;  %v1531_v40 = vmul.f32 1.442695, %v1510_v21  ;;  %3053 = vpow2.f32 %v1521_v27  ;;  %v1558_v44 = vsel %vm1464_vm7, %v4048_v36, 0.0 }
 0x5e1   : > { %1547 = vadd.xlane.f32.xlu1 %v1546_v35  ;;  %v1500_v38 = vpop.xlane.xlu1 %1499 }
 0x5e2   : > { %v1512_v39 = vsub.f32 %v3999_v52, %v1500_v38  ;;  %v1533_v42 = vmul.f32 1.442695, %v1511_v28 }
 0x5e3   : > { %v1606_v41 = vpop.permute.xlu0 %1605 }
 0x5e4   : > { %v1535_v43 = vmul.f32 1.442695, %v1512_v39  ;;  %2764 = vmatprep.subr.bf16.mxu1 %v1606_v41 }
 0x5e5   : > { %2765 = vmatpush3.bf16.msra.mxu1 %v1606_v41  ;;  %1559 = vadd.xlane.f32.xlu1 %v1558_v44  ;;  %v1669_v45 = vpop.permute.xlu1 %1668 }
 0x5e6   : > { %3055 = vpow2.f32 %v1535_v43  ;;  %2772 = vmatprep.subr.bf16.mxu0 %v1669_v45 }
 0x5e7   : > { %3057 = vpow2.f32 %v1531_v40  ;;  %2773 = vmatpush3.bf16.msra.mxu0 %v1669_v45  ;;  %v1731_v51 = vpop.permute.xlu0 %1730 }
 0x5e8   : > { %v4053_v46 = vpop.eup %3049  ;;  %3059 = vpow2.f32 %v1533_v42 }
 0x5e9   : > { %v1608_v47 = vpop.permute.xlu1 %1607  ;;  %v1561_v48 = vsel %vm1464_vm7, %v4053_v46, 0.0  ;;  %v4057_v49 = vpop.eup %3051 }
 0x5ea   : > { %v1618_v50 = vsel %vm1616_vm8, %v1608_v47, 0  ;;  %1562 = vadd.xlane.f32.xlu0 %v1561_v48  ;;  %2840 = vmatprep.subr.msk.bf16.mxu1 %vm1616_vm8, %v1608_v47  ;;  %v1555_v53 = vsel %vm1464_vm7, %v4057_v49, 0.0  ;;  %v4063_v54 = vpop.eup %3053 }
 0x5eb   : > { %2767 = vmatpush3.bf16.msra.mxu1 %v1618_v50  ;;  %v1549_v58 = vsel %vm1464_vm7, %v4063_v54, 0.0 }
 0x5ec   : > { %2780 = vmatprep.subr.bf16.mxu1 %v1731_v51 }
 0x5ed   : > { %v1671_v52 = vpop.permute.xlu1 %1670 }
 0x5ee   : > { %v1680_v55 = vsel %vm1616_vm8, %v1671_v52, 0  ;;  %1556 = vadd.xlane.f32.xlu0 %v1555_v53  ;;  %2841 = vmatprep.subr.msk.bf16.mxu0 %vm1616_vm8, %v1671_v52 }
 0x5ef   : > { %2775 = vmatpush3.bf16.msra.mxu0 %v1680_v55 }
 0x5f0   : > { %v4067_v56 = vpop.eup %3055 }
 0x5f1   : > { %v4069_v57 = vpop.eup %3057  ;;  %v4071_v31 = vpop.permute.xlu1 %1792  ;;  %v1570_v29 = vsel %vm1464_vm7, %v4067_v56, 0.0 }
 0x5f2   : > { %v4077_v59 = vpop.eup %3059  ;;  %1550 = vadd.xlane.f32.xlu0 %v1549_v58  ;;  %1571 = vadd.xlane.f32.xlu1 %v1570_v29  ;;  %v1564_v32 = vsel %vm1464_vm7, %v4069_v57, 0.0 }
 0x5f3   : > { %2788 = vmatprep.subr.bf16.mxu0 %v4071_v31  ;;  %v1567_v22 = vsel %vm1464_vm7, %v4077_v59, 0.0 }
 0x5f6   : > { %1568 = vadd.xlane.f32.xlu0 %v1567_v22  ;;  %1565 = vadd.xlane.f32.xlu1 %v1564_v32 }
 0x607   : > { %1794 = vrot.lane.b32.xlu1 %v3928_v37, %s3391_s5 }
 0x60c   : > { %1732 = vrot.lane.b32.xlu0 %v3919_v33, %s3391_s5 }
 0x618   : > { %v1545_v30 = vpop.xlane.xlu0 %1544 }
 0x619   : > { %3061 = vrcp.f32 %v1545_v30  ;;  %v3024_v30 = vld [vmem:[%s3809_s25 + $0x8] sm:$0xff]  }
 0x61c   : > { %v1539_v61 = vpop.xlane.xlu0 %1538 }
 0x61d   : > { %3063 = vrcp.f32 %v1539_v61 }
 0x622   : > { %v1542_v63 = vpop.xlane.xlu1 %1541 }
 0x623   : > { %3065 = vrcp.f32 %v1542_v63  ;;  %v3062_v0 = vpop.eup %3061 }
 0x624   : > { %v1587_v3 = vmul.f32 %v3062_v0, %v4020_v60 }
 0x626   : > { %v1598_v37 = vpack.c.bf16 %v1587_v3, %v1587_v3 }
 0x627   : > { %v3064_v1 = vpop.eup %3063 }
 0x628   : > { %v1585_v4 = vmul.f32 %v3064_v1, %v4024_v34 }
 0x62d   : > { %v3066_v2 = vpop.eup %3065 }
 0x62e   : > { %v1586_v5 = vmul.f32 %v3066_v2, %v4028_v62 }
 0x630   : > { %v1597_v6 = vpack.c.bf16 %v1586_v5, %v1585_v4 }
 0x632   : > { %2768 = vmatprep.mubr.msk.bf16.mxu1 %vm1464_vm7, %v1597_v6 }
 0x633   : > { %2769 = vmatmul.mubr.msk.bf16.vlgmr.msra.gmra.mrb[8].mxu1 %vm1464_vm7, %v1598_v37 }
 0x634   : > { %2781 = vmatpush3.bf16.msra.mxu1 %v1731_v51 }
 0x66a   : > { %v1554_v33 = vpop.xlane.xlu1 %1553 }
 0x66e   : > { %v1548_v7 = vpop.xlane.xlu1 %1547 }
 0x672   : > { %v1560_v8 = vpop.xlane.xlu1 %1559 }
 0x677   : > { %v1563_v9 = vpop.xlane.xlu0 %1562 }
 0x678   : > { %3067 = vrcp.f32 %v1563_v9 }
 0x679   : > { %3069 = vrcp.f32 %v1560_v8 }
 0x67b   : > { %v1557_v10 = vpop.xlane.xlu0 %1556 }
 0x67c   : > { %3071 = vrcp.f32 %v1557_v10 }
 0x67d   : > { %3073 = vrcp.f32 %v1554_v33 }
 0x67e   : > { %3075 = vrcp.f32 %v1548_v7 }
 0x67f   : > { %v1551_v60 = vpop.xlane.xlu0 %1550  ;;  %v1572_v34 = vpop.xlane.xlu1 %1571 }
 0x680   : > { %3077 = vrcp.f32 %v1551_v60 }
 0x681   : > { %3079 = vrcp.f32 %v1572_v34 }
 0x682   : > { %v3068_v62 = vpop.eup %3067 }
 0x683   : > { %v1569_v11 = vpop.xlane.xlu0 %1568  ;;  %v1566_v12 = vpop.xlane.xlu1 %1565  ;;  %v1593_v16 = vmul.f32 %v3068_v62, %v4053_v46 }
 0x684   : > { %v3070_v13 = vpop.eup %3069  ;;  %3081 = vrcp.f32 %v1569_v11 }
 0x685   : > { %3083 = vrcp.f32 %v1566_v12  ;;  %v1592_v21 = vmul.f32 %v3070_v13, %v4048_v36  ;;  %v1602_v39 = vpack.c.bf16 %v1593_v16, %v1593_v16 }
 0x686   : > { %v3072_v15 = vpop.eup %3071 }
 0x687   : > { %v3074_v17 = vpop.eup %3073  ;;  %v1733_v18 = vpop.permute.xlu0 %1732  ;;  %v1591_v20 = vmul.f32 %v3072_v15, %v4057_v49 }
 0x688   : > { %v3076_v23 = vpop.eup %3075  ;;  %v1742_v27 = vsel %vm1616_vm8, %v1733_v18, 0  ;;  %2842 = vmatprep.subr.msk.bf16.mxu1 %vm1616_vm8, %v1733_v18  ;;  %v1590_v38 = vmul.f32 %v3074_v17, %v4037_v14  ;;  %v1795_v47 = vpop.permute.xlu1 %1794 }
 0x689   : > { %2783 = vmatpush3.bf16.msra.mxu1 %v1742_v27  ;;  %v1601_v28 = vpack.c.bf16 %v1592_v21, %v1591_v20  ;;  %v1588_v40 = vmul.f32 %v3076_v23, %v4042_v19  ;;  %v1804_v49 = vsel %vm1616_vm8, %v1795_v47, 0 }
 0x68a   : > { %v3078_v35 = vpop.eup %3077  ;;  %v1600_v44 = vpack.c.bf16 %v1590_v38, %v1590_v38 }
 0x68b   : > { %2784 = vmatprep.mubr.msk.bf16.mxu1 %vm1464_vm7, %v1601_v28  ;;  %v1589_v41 = vmul.f32 %v3078_v35, %v4063_v54  ;;  %v3080_v36 = vpop.eup %3079  ;;  %v2626_v35 = vld [vmem:[%s4381_s28] ss:$0 sm:$0xff] }
 0x68c   : > { %2785 = vmatmul.mubr.msk.bf16.vlgmr.msra.gmra.mrb[12].mxu1 %vm1464_vm7, %v1602_v39  ;;  %v1596_v19 = vmul.f32 %v3080_v36, %v4067_v56  ;;  %v3023_v56 = vld [vmem:[%s3809_s25] sm:$0xff]  }
 0x68d   : > { %v1599_v42 = vpack.c.bf16 %v1589_v41, %v1588_v40  ;;  %2796 = vmatprep.subr.bf16.mxu1 %v3023_v56 }
 0x68e   : > { %v3082_v43 = vpop.eup %3081  ;;  %v1604_v50 = vpack.c.bf16 %v1596_v19, %v1596_v19  ;;  %2797 = vmatpush3.bf16.msra.mxu1 %v3023_v56 }
 0x68f   : > { %v3084_v45 = vpop.eup %3083  ;;  %2776 = vmatprep.mubr.msk.bf16.mxu0 %vm1464_vm7, %v1599_v42  ;;  %v1595_v46 = vmul.f32 %v3082_v43, %v4077_v59  ;;  %2798 = vmatprep.subr.bf16.mxu1 %v3024_v30 }
 0x690   : > { %2777 = vmatmul.mubr.msk.bf16.vlgmr.msra.gmra.mrb[12].mxu0 %vm1464_vm7, %v1600_v44  ;;  %v1594_v14 = vmul.f32 %v3084_v45, %v4069_v57 }
 0x691   : > { %2789 = vmatpush3.bf16.msra.mxu0 %v4071_v31 }
 0x692   : > { %2843 = vmatprep.subr.msk.bf16.mxu0 %vm1616_vm8, %v1795_v47  ;;  %v1603_v48 = vpack.c.bf16 %v1595_v46, %v1594_v14  ;;  %2799 = vmatpush3.bf16.msra.mxu1 %v3024_v30 }
 0x694   : > { %2792 = vmatprep.mubr.msk.bf16.mxu0 %vm1464_vm7, %v1603_v48 }
 0x695   : > { %2791 = vmatpush3.bf16.msra.mxu0 %v1804_v49 }
 0x698   : > { %2793 = vmatmul.mubr.msk.bf16.vlgmr.msra.gmra.mrb[16].mxu0 %vm1464_vm7, %v1604_v50 }
 0x706   : > { %v2770_v51 = vpop.f32.mrb[8].mxu1 }
 0x707   : > { %v1654_v52 = vpop.f32.mrb[9].mxu1 }
 0x708   : > { %v2771_v53 = vpop.f32.mrb[10].mxu1 }
 0x709   : > { %v1657_v54 = vpop.f32.mrb[11].mxu1 }
 0x75f   : > { %v2786_v55 = vpop.f32.mrb[12].mxu1 }
 0x760   : > { %v1778_v57 = vpop.f32.mrb[13].mxu1 }
 0x761   : > { %v2787_v31 = vpop.f32.mrb[14].mxu1 }
 0x762   : > { %v1781_v58 = vpop.f32.mrb[15].mxu1 }
 0x763   : > { %v3011_v29 = vpack.i.bf16 %v1781_v58, %v1778_v57  ;;  %v2778_v59 = vpop.f32.mrb[12].mxu0 }
 0x764   : > { %1861 = vrot.lane.b32.xlu1 %v2778_v59, %s3392_s21  ;;  %v1716_v22 = vpop.f32.mrb[13].mxu0 }
 0x765   : > { %v2779_v32 = vpop.f32.mrb[14].mxu0 }
 0x766   : > { %v1719_v61 = vpop.f32.mrb[15].mxu0 }
 0x767   : > { %v3006_v63 = vpack.i.bf16 %v1719_v61, %v1716_v22 }
 0x768   : > { %1873 = vrot.lane.b32.xlu1 %v2786_v55, %s3393_s15 }
 0x769   : > { %3007 = vrot.lane.b32.xlu0 %v3006_v63, %s3392_s21  ;;  %s4387_s21 = sld [smem:[#allocation49_spill]] (!%p2645_p13) }
 0x76b   : > { %v2794_v0 = vpop.f32.mrb[16].mxu0 }
 0x76c   : > { %1885 = vrot.lane.b32.xlu1 %v2794_v0, %s3394_s4  ;;  %v1840_v1 = vpop.f32.mrb[17].mxu0 }
 0x76d   : > { %3012 = vrot.lane.b32.xlu0 %v3011_v29, %s3393_s15  ;;  %v2795_v2 = vpop.f32.mrb[18].mxu0 }
 0x76e   : > { %v1843_v3 = vpop.f32.mrb[19].mxu0 }
 0x76f   : > { %v3016_v4 = vpack.i.bf16 %v1843_v3, %v1840_v1 }
 0x771   : > { %3017 = vrot.lane.b32.xlu0 %v3016_v4, %s3394_s4 }
 0x7d6   : > { %v1862_v5 = vpop.permute.xlu1 %1861 }
 0x7d7   : > { %v1892_v60 = vsel %vm1187_vm5, %v2770_v51, %v1862_v5  ;;  %v3025_v51 = vld [vmem:[%s3826_s10] sm:$0xff]  }
 0x7d8   : > { %2804 = vmatprep.subr.bf16.mxu0 %v3025_v51 }
 0x7d9   : > { %2805 = vmatpush3.bf16.msra.mxu0 %v3025_v51 }
 0x7da   : > { %v1874_v37 = vpop.permute.xlu1 %1873 }
 0x7db   : > { %v3008_v6 = vpop.permute.xlu0 %3007  ;;  %v1896_v62 = vsel %vm1893_vm9, %v1892_v60, %v1874_v37 }
 0x7dc   : > { %v3010_v7 = vunpack.i.h.bf16 %v3008_v6  ;;  %v3009_v8 = vunpack.i.l.bf16 %v3008_v6 }
 0x7de   : > { %v1886_v34 = vpop.permute.xlu1 %1885  ;;  %v1891_v12 = vsel %vm1187_vm5, %v1657_v54, %v3010_v7  ;;  %v1890_v13 = vsel %vm1187_vm5, %v1654_v52, %v3009_v8  ;;  %v3026_v52 = vld [vmem:[%s3826_s10 + $0x8] sm:$0xff]  }
 0x7df   : > { %v3013_v33 = vpop.permute.xlu0 %3012  ;;  %v1899_v17 = vsel %vm1464_vm7, %v1896_v62, %v1886_v34  ;;  %2806 = vmatprep.subr.bf16.mxu0 %v3026_v52  ;;  %v2631_v62 = vld [vmem:[%s881_s2] ss:$0 sm:$0xff] }
 0x7e0   : > { %v3015_v9 = vunpack.i.h.bf16 %v3013_v33  ;;  %v3014_v10 = vunpack.i.l.bf16 %v3013_v33  ;;  %v1901_v28 = vpack.c.bf16 %v1899_v17, %v1899_v17  ;;  %2807 = vmatpush3.bf16.msra.mxu0 %v3026_v52 }
 0x7e2   : > { %v1895_v18 = vsel %vm1893_vm9, %v1891_v12, %v3015_v9  ;;  %v1894_v20 = vsel %vm1893_vm9, %v1890_v13, %v3014_v10 }
 0x7e3   : > { %v3018_v11 = vpop.permute.xlu0 %3017 }
 0x7e4   : > { %v3020_v15 = vunpack.i.h.bf16 %v3018_v11  ;;  %v3019_v16 = vunpack.i.l.bf16 %v3018_v11 }
 0x7e6   : > { %v1898_v21 = vsel %vm1464_vm7, %v1895_v18, %v3020_v15  ;;  %v1897_v23 = vsel %vm1464_vm7, %v1894_v20, %v3019_v16  ;;  %v2632_v16 = vld [vmem:[%s884_s7] ss:$0 sm:$0xff] }
 0x7e7   : > { %v1900_v27 = vpack.c.bf16 %v1898_v21, %v1897_v23 }
 0x7e9   : > { %2800 = vmatprep.mubr.msk.bf16.mxu1 %vm1020_vm4, %v1900_v27 }
 0x7ea   : > { %2801 = vmatmul.mubr.msk.bf16.vlgmr.msra.gmra.mrb[16].mxu1 %vm1020_vm4, %v1901_v28 }
 0x8bd   : > { %v2802_v38 = vpop.f32.mrb[16].mxu1 }
 0x8be   : > { %v1974_v39 = vadd.f32 %v2802_v38, %v2626_v35  ;;  %v1965_v40 = vpop.f32.mrb[17].mxu1  ;;  %v3027_v38 = vld [vmem:[%s3836_s13] sm:$0xff]  }
 0x8bf   : > { %v1966_v41 = vadd.f32 %v2626_v35, %v1965_v40  ;;  %v2803_v36 = vpop.f32.mrb[18].mxu1  ;;  %2812 = vmatprep.subr.bf16.mxu1 %v3027_v38  ;;  %v3029_v40 = vld [vmem:[%s3836_s13 + $0x10] sm:$0xff]  }
 0x8c0   : > { %v4129_v42 = vadd.f32 %v1974_v39, %v3856_v24  ;;  %v1968_v43 = vpop.f32.mrb[19].mxu1  ;;  %v3028_v39 = vld [vmem:[%s3836_s13 + $0x8] sm:$0xff]   ;;  %2813 = vmatpush3.bf16.msra.mxu1 %v3027_v38  ;;  %v2633_v36 = vld [vmem:[%s892_s23] ss:$0 sm:$0xff] }
 0x8c1   : > { %v1969_v44 = vadd.f32 %v2626_v35, %v1968_v43  ;;  %v4132_v45 = vadd.f32 %v1966_v41, %v3858_v25  ;;  %2814 = vmatprep.subr.bf16.mxu1 %v3028_v39  ;;  %v3030_v41 = vld [vmem:[%s3836_s13 + $0x18] sm:$0xff]  }
 0x8c2   : > { %v1990_v46 = vsel %vm1020_vm4, %v4129_v42, 0.0  ;;  %v1998_v24 = vmul.f32 %v4129_v42, %v4129_v42 }
 0x8c3   : > { %v4137_v14 = vadd.f32 %v1969_v44, %v3860_v26  ;;  %1991 = vadd.xlane.f32.xlu0 %v1990_v46  ;;  %v1984_v25 = vsel %vm1020_vm4, %v4132_v45, 0.0  ;;  %v1996_v19 = vmul.f32 %v4132_v45, %v4132_v45 }
 0x8c4   : > { %v2005_v48 = vsel %vm1020_vm4, %v1998_v24, 0.0  ;;  %2815 = vmatpush3.bf16.msra.mxu1 %v3028_v39 }
 0x8c5   : > { %v1987_v47 = vsel %vm1020_vm4, %v4137_v14, 0.0  ;;  %v1999_v26 = vsel %vm1020_vm4, %v1996_v19, 0.0  ;;  %v1997_v49 = vmul.f32 %v4137_v14, %v4137_v14  ;;  %2816 = vmatprep.subr.bf16.mxu1 %v3029_v40 }
 0x8c6   : > { %1988 = vadd.xlane.f32.xlu1 %v1987_v47 }
 0x8c7   : > { %1985 = vadd.xlane.f32.xlu0 %v1984_v25  ;;  %v2002_v50 = vsel %vm1020_vm4, %v1997_v49, 0.0 }
 0x8c8   : > { %2817 = vmatpush3.bf16.msra.mxu1 %v3029_v40 }
 0x8c9   : > { %2818 = vmatprep.subr.bf16.mxu1 %v3030_v41 }
 0x8ca   : > { %2006 = vadd.xlane.f32.xlu1 %v2005_v48 }
 0x8cb   : > { %2000 = vadd.xlane.f32.xlu0 %v1999_v26 }
 0x8cc   : > { %2819 = vmatpush3.bf16.msra.mxu1 %v3030_v41 }
 0x8cf   : > { %2003 = vadd.xlane.f32.xlu0 %v2002_v50 }
 0x950   : > { %v1992_v53 = vpop.xlane.xlu0 %1991 }
 0x951   : > { %v1995_v55 = vmul.f32 0.03125, %v1992_v53 }
 0x953   : > { %v1989_v54 = vpop.xlane.xlu1 %1988  ;;  %v2013_v58 = vmul.f32 %v1995_v55, %v1995_v55  ;;  %v2022_v8 = vsub.f32 %v4129_v42, %v1995_v55 }
 0x954   : > { %v1986_v57 = vpop.xlane.xlu0 %1985  ;;  %v1994_v22 = vmul.f32 0.03125, %v1989_v54 }
 0x955   : > { %v1993_v31 = vmul.f32 0.03125, %v1986_v57 }
 0x956   : > { %v2012_v2 = vmul.f32 %v1994_v22, %v1994_v22  ;;  %v2021_v12 = vsub.f32 %v4137_v14, %v1994_v22 }
 0x957   : > { %v2007_v56 = vpop.xlane.xlu1 %2006  ;;  %v2011_v32 = vmul.f32 %v1993_v31, %v1993_v31  ;;  %v2020_v10 = vsub.f32 %v4132_v45, %v1993_v31 }
 0x958   : > { %v2010_v29 = vmul.f32 0.03125, %v2007_v56  ;;  %v2001_v59 = vpop.xlane.xlu0 %2000 }
 0x959   : > { %v2008_v30 = vmul.f32 0.03125, %v2001_v59 }
 0x95a   : > { %v2016_v61 = vsub.f32 %v2010_v29, %v2013_v58 }
 0x95b   : > { %v2014_v63 = vsub.f32 %v2008_v30, %v2011_v32 }
 0x95c   : > { %v2019_v0 = vmax.f32 %v2016_v61, 0.0  ;;  %v2004_v1 = vpop.xlane.xlu0 %2003 }
 0x95d   : > { %v2017_v3 = vmax.f32 %v2014_v63, 0.0  ;;  %v2009_v4 = vmul.f32 0.03125, %v2004_v1 }
 0x95e   : > { %v2025_v5 = vadd.f32 1e-05, %v2019_v0 }
 0x95f   : > { %v2023_v6 = vadd.f32 1e-05, %v2017_v3  ;;  %v2015_v37 = vsub.f32 %v2009_v4, %v2012_v2 }
 0x960   : > { %3085 = vrsqrt.f32 %v2025_v5 }
 0x961   : > { %3087 = vrsqrt.f32 %v2023_v6  ;;  %v2018_v33 = vmax.f32 %v2015_v37, 0.0 }
 0x963   : > { %v2024_v7 = vadd.f32 1e-05, %v2018_v33 }
 0x965   : > { %3089 = vrsqrt.f32 %v2024_v7  ;;  %v2638_v7 = vld [vmem:[%s900_s20] ss:$0 sm:$0xff] }
 0x96a   : > { %v3086_v9 = vpop.eup %3085 }
 0x96b   : > { %v3088_v60 = vpop.eup %3087  ;;  %v2031_v34 = vmul.f32 %v3086_v9, %v2022_v8 }
 0x96c   : > { %v2029_v11 = vmul.f32 %v3088_v60, %v2020_v10 }
 0x96d   : > { %v2040_v15 = vmul.f32 %v2631_v62, %v2031_v34 }
 0x96e   : > { %v2038_v18 = vmul.f32 %v2631_v62, %v2029_v11 }
 0x96f   : > { %v3090_v13 = vpop.eup %3089  ;;  %v2049_v21 = vadd.f32 %v2632_v16, %v2040_v15 }
 0x970   : > { %v2030_v17 = vmul.f32 %v3090_v13, %v2021_v12  ;;  %v2047_v23 = vadd.f32 %v2632_v16, %v2038_v18 }
 0x971   : > { %v2051_v35 = vpack.c.bf16 %v2049_v21, %v2049_v21 }
 0x972   : > { %v2039_v20 = vmul.f32 %v2631_v62, %v2030_v17  ;;  %v2267_v17 = vld [vmem:[%s4387_s21] sm:$0x1] (!%p2645_p13) }
 0x974   : > { %v2048_v27 = vadd.f32 %v2632_v16, %v2039_v20  ;;  %v3097_v16 = vld [vmem:[%s4386_s12] sm:$0xff] (!%p2645_p13)  }
 0x976   : > { %v2050_v28 = vpack.c.bf16 %v2048_v27, %v2047_v23 }
 0x978   : > { %2808 = vmatprep.mubr.msk.bf16.mxu0 %vm1020_vm4, %v2050_v28 }
 0x979   : > { %2809 = vmatmul.mubr.msk.bf16.vlgmr.msra.gmra.mrb[20].mxu0 %vm1020_vm4, %v2051_v35 }
 0xa4c   : > { %v2810_v43 = vpop.f32.mrb[20].mxu0 }
 0xa4d   : > { %v2124_v44 = vadd.f32 %v2810_v43, %v2633_v36  ;;  %v2115_v46 = vpop.f32.mrb[21].mxu0 }
 0xa4e   : > { %v2116_v47 = vadd.f32 %v2633_v36, %v2115_v46  ;;  %v2811_v24 = vpop.f32.mrb[22].mxu0 }
 0xa4f   : > { %v2134_v25 = vmul.f32 0.044715, %v2124_v44  ;;  %v2118_v19 = vpop.f32.mrb[23].mxu0  ;;  %v2131_v0 = vmul.f32 0.5, %v2124_v44 }
 0xa50   : > { %v2132_v48 = vmul.f32 0.044715, %v2116_v47  ;;  %v2119_v26 = vadd.f32 %v2633_v36, %v2118_v19  ;;  %v2129_v1 = vmul.f32 0.5, %v2116_v47 }
 0xa51   : > { %v2137_v49 = vmul.f32 %v2134_v25, %v2124_v44 }
 0xa52   : > { %v2135_v50 = vmul.f32 %v2132_v48, %v2116_v47  ;;  %v2133_v51 = vmul.f32 0.044715, %v2119_v26  ;;  %v2130_v2 = vmul.f32 0.5, %v2119_v26 }
 0xa53   : > { %v2140_v52 = vmul.f32 %v2137_v49, %v2124_v44 }
 0xa54   : > { %v2138_v53 = vmul.f32 %v2135_v50, %v2116_v47  ;;  %v2136_v54 = vmul.f32 %v2133_v51, %v2119_v26 }
 0xa55   : > { %v2143_v55 = vadd.f32 %v2140_v52, %v2124_v44 }
 0xa56   : > { %v2141_v57 = vadd.f32 %v2138_v53, %v2116_v47  ;;  %v2139_v31 = vmul.f32 %v2136_v54, %v2119_v26 }
 0xa57   : > { %v2146_v56 = vmul.f32 0.7978846, %v2143_v55 }
 0xa58   : > { %v2144_v58 = vmul.f32 0.7978846, %v2141_v57  ;;  %v2142_v29 = vadd.f32 %v2139_v31, %v2119_v26 }
 0xa59   : > { %3091 = vtanh.f32 %v2146_v56 }
 0xa5a   : > { %3093 = vtanh.f32 %v2144_v58  ;;  %v2145_v59 = vmul.f32 0.7978846, %v2142_v29 }
 0xa5c   : > { %3095 = vtanh.f32 %v2145_v59 }
 0xa63   : > { %v3092_v22 = vpop.eup %3091 }
 0xa64   : > { %v3094_v32 = vpop.eup %3093  ;;  %v2152_v30 = vadd.f32 1.0, %v3092_v22 }
 0xa65   : > { %v2150_v61 = vadd.f32 1.0, %v3094_v32 }
 0xa66   : > { %v3096_v63 = vpop.eup %3095  ;;  %v2155_v4 = vmul.f32 %v2152_v30, %v2131_v0 }
 0xa67   : > { %v2151_v3 = vadd.f32 1.0, %v3096_v63  ;;  %v2153_v5 = vmul.f32 %v2150_v61, %v2129_v1 }
 0xa68   : > { %v2157_v33 = vpack.c.bf16 %v2155_v4, %v2155_v4 }
 0xa69   : > { %v2154_v6 = vmul.f32 %v2151_v3, %v2130_v2 }
 0xa6b   : > { %v2156_v37 = vpack.c.bf16 %v2154_v6, %v2153_v5 }
 0xa6d   : > { %2820 = vmatprep.mubr.msk.bf16.mxu1 %vm2197_vm10, %v2156_v37 }
 0xa6e   : > { %2821 = vmatmul.mubr.msk.bf16.vlgmr.msra.gmra.mrb[20].mxu1 %vm2197_vm10, %v2157_v33 }
 0xb41   : > { %v2822_v8 = vpop.f32.mrb[20].mxu1 }
 0xb42   : > { %v2247_v9 = vadd.f32 %v2822_v8, %v2638_v7  ;;  %v2238_v10 = vpop.f32.mrb[21].mxu1 }
 0xb43   : > { %v2239_v60 = vadd.f32 %v2638_v7, %v2238_v10  ;;  %v2823_v34 = vpop.f32.mrb[22].mxu1  ;;  %2261 = sbr.rel (%p2645_p13) target bundleno = 3108 (0xc24), region = 128 }
 0xb44   : > { %v2254_v62 = vadd.f32 %v2247_v9, %v4129_v42  ;;  %v2241_v11 = vpop.f32.mrb[23].mxu1  ;;  %v3395_v42 = vmov (!%p2645_p13), 0.0  }
 0xb45   : > { %v2252_v12 = vadd.f32 %v2239_v60, %v4132_v45  ;;  %v2242_v13 = vadd.f32 %v2638_v7, %v2241_v11  ;;  %2824 = vmatprep.subr.bf16.mxu0 (!%p2645_p13), %v3395_v42  ;;  %v3098_v45 = vld [vmem:[%s4386_s12 + $0x8] sm:$0xff] (!%p2645_p13)   ;;  %2828 = vmatprep.mubr.msk.bf16.mxu0 (!%p2645_p13), %vm3396_vm11, %v3395_v42 }
 0xb46   : > { %2257 = vst.msk [vmem:[#allocation2 + $0x10] sm:$0xff] %vm1020_vm4, %v2254_v62  ;;  %2825 = vmatpush3.bf16.msra.mxu0 (!%p2645_p13), %v3097_v16 }
 0xb47   : > { %2255 = vst.msk [vmem:[#allocation2] sm:$0xff] %vm1020_vm4, %v2252_v12  ;;  %v2253_v15 = vadd.f32 %v2242_v13, %v4137_v14  ;;  %2826 = vmatprep.subr.bf16.mxu0 (!%p2645_p13), %v3395_v42  ;;  %v2262_v14 = vpack.c.bf16 (!%p2645_p13), %v2252_v12, %v2252_v12 }
 0xb49   : > { %2256 = vst.msk [vmem:[#allocation2 + $0x8] sm:$0xff] %vm1020_vm4, %v2253_v15 }
 0xb4a   : > { %2827 = vmatpush3.bf16.msra.mxu0 %v3098_v45 }
 0xb4d   : > { %2829 = vmatmul.mubr.msk.bf16.vlgmr.msra.gmra.mrb[0].mxu0 %vm1020_vm4, %v2262_v14 }
 0xc20   : > { %v2317_v18 = vpop.f32.mrb[0].mxu0 }
 0xc21   : > { %v2318_v20 = vadd.f32 %v2317_v18, %v2267_v17  ;;  %v2830_v21 = vpop.f32.mrb[1].mxu0 }
 0xc22   : > { %v2320_v23 = vpop.f32.mrb[2].mxu0 }
 0xc23   : > { %2323 = vst [vmem:[%s3844_s14] sm:$0x1] %v2318_v20  ;;  %v2831_v27 = vpop.f32.mrb[3].mxu0 }
 0xc24 PF: > { %s4388_s15 = sld [smem:[#allocation25_spill]]  ;;  %s2649_s4 = sshll.u32 %s3363_s26, 4 }
 0xc25   : > { %s4389_s18 = sld [smem:[#allocation50_spill]]  ;;  %s2337_s10 = sshll.u32 %s3844_s14, 4  ;;  %s2338_s10 = int_to_ptr.vmem [resolvable:$true] %s2337_s10 }
 0xc26   : > { %s4390_s17 = sand.u32 1, %s3339_s22   ;;  %s3241_s29 = scalar_lea.vmem %s2338_s10, 16 }
 0xc27   : > { %s2325_s9 = scalar_lea.sflag [#allocation5], %s4390_s17  ;;  %p3242_p1 = scmp.ne.s32.totalorder %s2338_s10, %s3241_s29 }
 0xc28   : > { %s3397_s8 = smov [#allocation12]  }
 0xc29   : > { %s3245_s1 = sshll.u32 %s3397_s8, 4  ;;  %s3246_s1 = int_to_ptr.vmem [resolvable:$false] %s3245_s1 }
 0xc2a   : > { %p4391_p11 = scmp.ne.s32.totalorder %s4388_s15, 0  ;;  %s3247_s7 = scalar_lea.vmem %s3246_s1, 32 }
 0xc2b   : > { %s4205_s28 = scalar_lea.hbm %s4389_s18, %s2649_s4  ;;  %p3248_p10 = scmp.lt.s32.totalorder %s2338_s10, %s3246_s1 }
 0xc2c   : > { %p3243_p0 = pnand %p3242_p1, %p4391_p11  ;;  %p3249_p6 = scmp.lt.s32.totalorder %s3247_s7, %s3241_s29 }
 0xc2e   : > { %p3244_p12 = pneg %p3243_p0  ;;  %p3250_p8 = por %p3249_p6, %p3248_p10 }
 0xc30   : > { %p3251_p9 = pnand %p3250_p8, %p3244_p12 }
 0xc32   : > { %3254 = shalt.err (!%p3251_p9)
}
 0xc33   : > { %s3255_s26 = scalar_lea.hbm %s4205_s28, 16  ;;  %s3259_s24 = scalar_lea.hbm %s4389_s18, 32 }
 0xc34   : > { %p3256_p3 = scmp.ne.s32.totalorder %s4205_s28, %s3255_s26  ;;  %p3260_p7 = scmp.lt.u32.totalorder %s4205_s28, %s4389_s18 }
 0xc35   : > { %p3261_p2 = scmp.lt.u32.totalorder %s3259_s24, %s3255_s26  ;;  %p3263_p1 = scmp.lt.u32.totalorder %s3255_s26, %s4205_s28 }
 0xc36   : > { %p3257_p5 = pnand %p3256_p3, %p4391_p11 }
 0xc37   : > { %p3262_p13 = por %p3261_p2, %p3260_p7 }
 0xc38   : > { %p3258_p4 = pneg %p3257_p5 }
 0xc39   : > { %p3264_p0 = por %p3263_p1, %p3262_p13 }
 0xc3b   : > { %p3265_p12 = pnand %p3264_p0, %p3258_p4 }
 0xc3d   : > { %3268 = shalt.err (!%p3265_p12)
}
 0xc3e   : > { %2862 = dma.vmem_to_hbm [thread:$0]  (%p4391_p11), %s2338_s10, 16, %s4205_s28, %s2325_s9  }
 0xc3f PF: > { %s4392_s30 = sld [smem:[#allocation24_spill]]  ;;  %s4393_s19 = sld [smem:[#allocation18_spill]] }
 0xc40   : > { %s4394_s20 = sld [smem:[#allocation26_spill]] }
 0xc45   : > { %p2894_p10 = scmp.ge.s32.totalorder %s4392_s30, 2  ;;  %s2349_s11 = sand.u32 1, %s4393_s19  }
 0xc46   : > { %p4395_p6 = scmp.ne.s32.totalorder %s4394_s20, 0  ;;  %s2350_s0 = scalar_lea.sflag [#allocation5], %s2349_s11 }
 0xc48   : > { %p2882_p8 = pnand %p2894_p10, %p4395_p6 }
 0xc4a   : > { %3330 = dma.done.wait (!%p2882_p8), %s2350_s0, 16  }
 0xc4b   : > { %3332 = vsyncadd (!%p2882_p8), %s2350_s0, 4294967280  ;;  %s36_s4 = sadd.s32 1, %s4392_s30   ;;  %s4396_s3 = sld [smem:[#allocation19_spill]] }
 0xc4c   : > { %p33_p9 = scmp.ge.s32.totalorder %s36_s4, 6   ;;  %s4397_s23 = sld [smem:[#allocation30_spill]] }
 0xc4d   : > { %s4398_s24 = sld [smem:[#allocation20_spill]]  ;;  %s4399_s2 = sld [smem:[#allocation21_spill]] }
 0xc4e   : > { %s4400_s25 = sld [smem:[#allocation29_spill]]  ;;  %s4401_s5 = sld [smem:[#allocation22_spill]] }
 0xc4f   : > { %s4402_s26 = sld [smem:[#allocation23_spill]]  ;;  %s4403_s27 = sld [smem:[#allocation27_spill]] }
 0xc50   : > { %s4404_s28 = sld [smem:[#allocation28_spill]]  ;;  %s4405_s1 = smov %s3339_s22 }
 0xc51   : > { %s4406_s22 = smov %s4396_s3  ;;  %35 = sbr.rel (!%p33_p9) target bundleno = 31 (0x1f), region = 204 }
 0xc54   : > { %s4407_s3 = smov %s4401_s5 }
 0xc58   :  { %2354 = vsyncpa [#allocation4], 1 }
 0xc59   :  { %2356 = vsyncpa [#allocation4 + $0x1], 1 }
 0xc5a   :  { %2357 = vsyncpa [#allocation7], 1 }
 0xc5b   :  { %2358 = vsyncpa [#allocation10], 1 }
 0xc5c   :  { %2359 = vsyncpa [#allocation5], 1 }
 0xc5d   :  { %2361 = vsyncpa [#allocation5 + $0x1], 1 }

</bundles_post_ra>
